<compile_context>
chip_gen: v6e
topology: v6e:2x2x1
jax: 0.10.0
libtpu: 0.0.40
codegen_flags: <defaults>
</compile_context>

<pallas_src>
import functools

import jax
import jax.numpy as jnp
from jax.experimental import pallas as pl
from jax.experimental.pallas import tpu as pltpu

# ----------------------- synthetic BERT config (small) -----------------------
VOCAB = 100
HIDDEN = 32
N_LAYERS = 2
N_HEADS = 4
HEAD_DIM = HIDDEN // N_HEADS
INTERMEDIATE = 64
MAX_POS = 16
TYPE_VOCAB = 2
CLASSES = 10
PAD_CLASSES = 128           # lane-dense classifier output; sliced back to CLASSES outside
LN_EPS = 1e-12


# ------------------------------ in-kernel helpers ------------------------------
def _layernorm(x, g, b):
    mean = jnp.mean(x, axis=-1, keepdims=True)
    c = x - mean
    var = jnp.mean(c * c, axis=-1, keepdims=True)
    return c * jax.lax.rsqrt(var + LN_EPS) * g + b


def _gelu_exact(x):
    # exact (erf) GELU to match PyTorch / HF BERT numerics
    return 0.5 * x * (1.0 + jax.lax.erf(x * 0.7071067811865476))


# ----------------------------- fused encoder kernel ----------------------------
def _encoder_kernel(
    emb_ref, mask_ref, eg_ref, eb_ref,                     # embeddings + mask + emb-LN
    wqkv_ref, bqkv_ref, wo_ref, bo_ref,                    # attention weights (stacked on L)
    ln1g_ref, ln1b_ref, w1_ref, b1_ref, w2_ref, b2_ref,    # FFN + LN (stacked on L)
    ln2g_ref, ln2b_ref,
    pw_ref, pb_ref, fw_ref, fb_ref,                        # pooler + classifier (lane-padded)
    logits_ref,                                            # output (B, PAD_CLASSES)
    h_ref, ctx_ref,                                        # VMEM scratch (B*S, HIDDEN) x2
    *, batch, seq,
):
    layer = pl.program_id(0)

    # Layer 0: embedding-sum LayerNorm (no residual) seeds the VMEM-resident activation.
    @pl.when(layer == 0)
    def _():
        h_ref[...] = _layernorm(emb_ref[...], eg_ref[...], eb_ref[...])

    h = h_ref[...]                                              # (B*S, H) f32

    # ---- fused QKV projection (1/sqrt(head_dim) pre-folded into the q columns) ----
    qkv = jnp.dot(h, wqkv_ref[0], preferred_element_type=jnp.float32) + bqkv_ref[0]
    q = qkv[:, 0 * HIDDEN:1 * HIDDEN]
    k = qkv[:, 1 * HIDDEN:2 * HIDDEN]
    v = qkv[:, 2 * HIDDEN:3 * HIDDEN]

    # ---- multi-head self-attention, (S, H) lane layout, static batch/head loops ----
    for b in range(batch):
        r0, r1 = b * seq, (b + 1) * seq
        bias = mask_ref[b:b + 1, :]                             # (1, S) additive mask bias
        for hh in range(N_HEADS):
            c0, c1 = hh * HEAD_DIM, (hh + 1) * HEAD_DIM
            qh = q[r0:r1, c0:c1]
            kh = k[r0:r1, c0:c1]
            vh = v[r0:r1, c0:c1]
            s = jnp.dot(qh, kh.T, preferred_element_type=jnp.float32) + bias
            s = s - jnp.max(s, axis=-1, keepdims=True)
            p = jnp.exp(s)
            p = p * pl.reciprocal(jnp.sum(p, axis=-1, keepdims=True), approx=True)
            ctx_ref[r0:r1, c0:c1] = jnp.dot(p, vh, preferred_element_type=jnp.float32)

    attn = jnp.dot(ctx_ref[...], wo_ref[0], preferred_element_type=jnp.float32) + bo_ref[0]
    h1 = _layernorm(attn + h, ln1g_ref[0], ln1b_ref[0])

    ff = jnp.dot(h1, w1_ref[0], preferred_element_type=jnp.float32) + b1_ref[0]
    ff = _gelu_exact(ff)
    ff = jnp.dot(ff, w2_ref[0], preferred_element_type=jnp.float32) + b2_ref[0]
    h2 = _layernorm(ff + h1, ln2g_ref[0], ln2b_ref[0])
    h_ref[...] = h2

    # ---- last layer: fused [CLS] pooler (tanh) + classifier, lane-dense output store ----
    @pl.when(layer == pl.num_programs(0) - 1)
    def _():
        for b in range(batch):                                  # stage [CLS] rows (reuse ctx)
            ctx_ref[b:b + 1, :] = h2[b * seq:b * seq + 1, :]
        cls = ctx_ref[0:batch, :]                               # (B, H)
        pooled = jnp.tanh(
            jnp.dot(cls, pw_ref[...], preferred_element_type=jnp.float32) + pb_ref[...])
        logits_ref[...] = (
            jnp.dot(pooled, fw_ref[...], preferred_element_type=jnp.float32) + fb_ref[...]
        ).astype(logits_ref.dtype)


def encoder_forward(emb, mask_bias, p, batch, seq):
    bs = batch * seq
    kernel = functools.partial(_encoder_kernel, batch=batch, seq=seq)
    grid_spec = pltpu.PrefetchScalarGridSpec(
        num_scalar_prefetch=0,
        grid=(N_LAYERS,),
        in_specs=[
            pl.BlockSpec((bs, HIDDEN), lambda l: (0, 0)),                  # embedding sum
            pl.BlockSpec((batch, seq), lambda l: (0, 0)),                  # additive mask (B,S)
            pl.BlockSpec((1, HIDDEN), lambda l: (0, 0)),                   # emb LN gamma
            pl.BlockSpec((1, HIDDEN), lambda l: (0, 0)),                   # emb LN beta
            pl.BlockSpec((1, HIDDEN, 3 * HIDDEN), lambda l: (l, 0, 0)),    # wqkv (stacked)
            pl.BlockSpec((1, 1, 3 * HIDDEN), lambda l: (l, 0, 0)),         # bqkv
            pl.BlockSpec((1, HIDDEN, HIDDEN), lambda l: (l, 0, 0)),        # wo
            pl.BlockSpec((1, 1, HIDDEN), lambda l: (l, 0, 0)),             # bo
            pl.BlockSpec((1, 1, HIDDEN), lambda l: (l, 0, 0)),             # ln1 gamma
            pl.BlockSpec((1, 1, HIDDEN), lambda l: (l, 0, 0)),             # ln1 beta
            pl.BlockSpec((1, HIDDEN, INTERMEDIATE), lambda l: (l, 0, 0)),  # w1
            pl.BlockSpec((1, 1, INTERMEDIATE), lambda l: (l, 0, 0)),       # b1
            pl.BlockSpec((1, INTERMEDIATE, HIDDEN), lambda l: (l, 0, 0)),  # w2
            pl.BlockSpec((1, 1, HIDDEN), lambda l: (l, 0, 0)),             # b2
            pl.BlockSpec((1, 1, HIDDEN), lambda l: (l, 0, 0)),             # ln2 gamma
            pl.BlockSpec((1, 1, HIDDEN), lambda l: (l, 0, 0)),             # ln2 beta
            pl.BlockSpec((HIDDEN, HIDDEN), lambda l: (0, 0)),              # pooler W
            pl.BlockSpec((1, HIDDEN), lambda l: (0, 0)),                   # pooler b
            pl.BlockSpec((HIDDEN, PAD_CLASSES), lambda l: (0, 0)),         # fc W (lane padded)
            pl.BlockSpec((1, PAD_CLASSES), lambda l: (0, 0)),              # fc b (lane padded)
        ],
        out_specs=pl.BlockSpec((batch, PAD_CLASSES), lambda l: (0, 0)),
        scratch_shapes=[pltpu.VMEM((bs, HIDDEN), jnp.float32),             # carried activation
                        pltpu.VMEM((bs, HIDDEN), jnp.float32)],            # attention context
    )
    return pl.pallas_call(
        kernel,
        out_shape=jax.ShapeDtypeStruct((batch, PAD_CLASSES), jnp.float32),
        grid_spec=grid_spec,
        compiler_params=pltpu.CompilerParams(
            dimension_semantics=("arbitrary",)),   # layer axis carries state sequentially
    )(emb, mask_bias, p["emb_ln_g"], p["emb_ln_b"],
      p["wqkv"], p["bqkv"], p["wo"], p["bo"],
      p["ln1_g"], p["ln1_b"], p["w1"], p["b1"], p["w2"], p["b2"],
      p["ln2_g"], p["ln2_b"],
      p["pooler_w"], p["pooler_b"], p["fc_w_pad"], p["fc_b_pad"])


# ------------------------------ parameter init --------------------------------
def init_params(key):
    def nrm(k, shape):
        return 0.02 * jax.random.normal(k, shape, jnp.float32)

    keys = jax.random.split(key, 5 + N_LAYERS)
    params = {
        "word_emb": nrm(keys[0], (VOCAB, HIDDEN)),
        "pos_emb": nrm(keys[1], (MAX_POS, HIDDEN)),
        "type_emb": nrm(keys[2], (TYPE_VOCAB, HIDDEN)),
        "emb_ln_g": jnp.ones((HIDDEN,), jnp.float32),
        "emb_ln_b": jnp.zeros((HIDDEN,), jnp.float32),
        "pooler_w": nrm(keys[3], (HIDDEN, HIDDEN)),
        "pooler_b": jnp.zeros((HIDDEN,), jnp.float32),
        "fc_w": nrm(keys[4], (HIDDEN, CLASSES)),
        "fc_b": jnp.zeros((CLASSES,), jnp.float32),
        "layers": [],
    }
    for l in range(N_LAYERS):
        lk = jax.random.split(keys[5 + l], 6)
        params["layers"].append({
            "wq": nrm(lk[0], (HIDDEN, HIDDEN)), "bq": jnp.zeros((HIDDEN,), jnp.float32),
            "wk": nrm(lk[1], (HIDDEN, HIDDEN)), "bk": jnp.zeros((HIDDEN,), jnp.float32),
            "wv": nrm(lk[2], (HIDDEN, HIDDEN)), "bv": jnp.zeros((HIDDEN,), jnp.float32),
            "wo": nrm(lk[3], (HIDDEN, HIDDEN)), "bo": jnp.zeros((HIDDEN,), jnp.float32),
            "ln1_g": jnp.ones((HIDDEN,), jnp.float32), "ln1_b": jnp.zeros((HIDDEN,), jnp.float32),
            "w1": nrm(lk[4], (HIDDEN, INTERMEDIATE)), "b1": jnp.zeros((INTERMEDIATE,), jnp.float32),
            "w2": nrm(lk[5], (INTERMEDIATE, HIDDEN)), "b2": jnp.zeros((HIDDEN,), jnp.float32),
            "ln2_g": jnp.ones((HIDDEN,), jnp.float32), "ln2_b": jnp.zeros((HIDDEN,), jnp.float32),
        })
    return params


def pack_params(params):
    """Stack per-layer weights on a leading L axis, fuse QKV, fold the attention scale,
    and lane-pad the classifier head."""
    scale = 1.0 / float(HEAD_DIM) ** 0.5
    layers = params["layers"]

    def stk(f):
        return jnp.stack([f(lp) for lp in layers], axis=0)

    packed = {
        "word_emb": params["word_emb"],
        "pos_emb": params["pos_emb"],
        "type_emb": params["type_emb"],
        "emb_ln_g": params["emb_ln_g"].reshape(1, HIDDEN),
        "emb_ln_b": params["emb_ln_b"].reshape(1, HIDDEN),
        # fused QKV with 1/sqrt(Dh) folded into the q columns
        "wqkv": stk(lambda lp: jnp.concatenate([lp["wq"] * scale, lp["wk"], lp["wv"]], axis=1)),
        "bqkv": stk(lambda lp: jnp.concatenate([lp["bq"] * scale, lp["bk"], lp["bv"]])[None, :]),
        "wo": stk(lambda lp: lp["wo"]),
        "bo": stk(lambda lp: lp["bo"][None, :]),
        "ln1_g": stk(lambda lp: lp["ln1_g"][None, :]),
        "ln1_b": stk(lambda lp: lp["ln1_b"][None, :]),
        "w1": stk(lambda lp: lp["w1"]),
        "b1": stk(lambda lp: lp["b1"][None, :]),
        "w2": stk(lambda lp: lp["w2"]),
        "b2": stk(lambda lp: lp["b2"][None, :]),
        "ln2_g": stk(lambda lp: lp["ln2_g"][None, :]),
        "ln2_b": stk(lambda lp: lp["ln2_b"][None, :]),
        "pooler_w": params["pooler_w"],
        "pooler_b": params["pooler_b"].reshape(1, HIDDEN),
        "fc_w_pad": jnp.zeros((HIDDEN, PAD_CLASSES), jnp.float32).at[:, :CLASSES].set(params["fc_w"]),
        "fc_b_pad": jnp.zeros((1, PAD_CLASSES), jnp.float32).at[0, :CLASSES].set(params["fc_b"]),
    }
    return packed


# --------------------------------- forward ------------------------------------
def bert_model_forward(packed, input_ids, attention_masks=None, token_type_ids=None):
    """Mirrors Bert_Model.forward: logits = fc(bert(...)[1])."""
    B, S = input_ids.shape
    if token_type_ids is None:
        token_type_ids = jnp.zeros_like(input_ids)

    # TODO(synk): embedding gather (nn.Embedding) done with jnp.take in plain JAX, not in-kernel.
    we = jnp.take(packed["word_emb"], input_ids, axis=0)                 # (B,S,H)
    pe = packed["pos_emb"][:S][None, :, :]                               # (1,S,H)
    te = jnp.take(packed["type_emb"], token_type_ids, axis=0)            # (B,S,H)
    emb = (we + pe + te).reshape(B * S, HIDDEN).astype(jnp.float32)

    # Additive mask bias kept at (B, S); broadcast happens on the VPU inside the kernel.
    if attention_masks is None:
        mask_bias = jnp.zeros((B, S), jnp.float32)
    else:
        mask_bias = (1.0 - attention_masks.astype(jnp.float32)) * -1e9

    logits_pad = encoder_forward(emb, mask_bias, packed, B, S)           # (B, PAD_CLASSES)
    return logits_pad[:, :CLASSES]


# ----------------------------------- main --------------------------------------
if __name__ == "__main__":
    key = jax.random.PRNGKey(0)
    pkey, ikey = jax.random.split(key)
    params = init_params(pkey)
    packed = pack_params(params)

    B, S = 2, 8
    input_ids = jax.random.randint(ikey, (B, S), 0, VOCAB, dtype=jnp.int32)
    attention_masks = jnp.ones((B, S), dtype=jnp.int32)
    token_type_ids = jnp.zeros((B, S), dtype=jnp.int32)

    logits = bert_model_forward(packed, input_ids, attention_masks, token_type_ids)
    logits = jax.block_until_ready(logits)
    assert logits.shape == (B, CLASSES) and logits.dtype == jnp.float32
    print("KERNEL_OK")
</pallas_src>

<mosaic_0001>
module attributes {stable_mosaic.version = 11 : i64} {
  func.func @_encoder_kernel(%arg0: i32, %arg1: memref<16x32xf32, #tpu.memory_space<vmem>>, %arg2: memref<2x8xf32, #tpu.memory_space<vmem>>, %arg3: memref<1x32xf32, #tpu.memory_space<vmem>>, %arg4: memref<1x32xf32, #tpu.memory_space<vmem>>, %arg5: memref<1x32x96xf32, #tpu.memory_space<vmem>>, %arg6: memref<1x1x96xf32, #tpu.memory_space<vmem>>, %arg7: memref<1x32x32xf32, #tpu.memory_space<vmem>>, %arg8: memref<1x1x32xf32, #tpu.memory_space<vmem>>, %arg9: memref<1x1x32xf32, #tpu.memory_space<vmem>>, %arg10: memref<1x1x32xf32, #tpu.memory_space<vmem>>, %arg11: memref<1x32x64xf32, #tpu.memory_space<vmem>>, %arg12: memref<1x1x64xf32, #tpu.memory_space<vmem>>, %arg13: memref<1x64x32xf32, #tpu.memory_space<vmem>>, %arg14: memref<1x1x32xf32, #tpu.memory_space<vmem>>, %arg15: memref<1x1x32xf32, #tpu.memory_space<vmem>>, %arg16: memref<1x1x32xf32, #tpu.memory_space<vmem>>, %arg17: memref<32x32xf32, #tpu.memory_space<vmem>>, %arg18: memref<1x32xf32, #tpu.memory_space<vmem>>, %arg19: memref<32x128xf32, #tpu.memory_space<vmem>>, %arg20: memref<1x128xf32, #tpu.memory_space<vmem>>, %arg21: memref<2x128xf32, #tpu.memory_space<vmem>>, %arg22: memref<16x32xf32, #tpu.memory_space<vmem>>, %arg23: memref<16x32xf32, #tpu.memory_space<vmem>>) attributes {dimension_semantics = [#tpu.dimension_semantics<arbitrary>], iteration_bounds = array<i64: 2>, scalar_prefetch = 0 : i64, scratch_operands = 2 : i64, tpu.core_type = #tpu.core_type<tc>, window_params = [{pipeline_mode = #tpu.pipeline_mode<synchronous>, transform_indices = @transform_0, window_bounds = array<i64: 16, 32>}, {pipeline_mode = #tpu.pipeline_mode<synchronous>, transform_indices = @transform_1, window_bounds = array<i64: 2, 8>}, {pipeline_mode = #tpu.pipeline_mode<synchronous>, transform_indices = @transform_2, window_bounds = array<i64: 1, 32>}, {pipeline_mode = #tpu.pipeline_mode<synchronous>, transform_indices = @transform_3, window_bounds = array<i64: 1, 32>}, {transform_indices = @transform_4, window_bounds = array<i64: 1, 32, 96>}, {transform_indices = @transform_5, window_bounds = array<i64: 1, 1, 96>}, {transform_indices = @transform_6, window_bounds = array<i64: 1, 32, 32>}, {transform_indices = @transform_7, window_bounds = array<i64: 1, 1, 32>}, {transform_indices = @transform_8, window_bounds = array<i64: 1, 1, 32>}, {transform_indices = @transform_9, window_bounds = array<i64: 1, 1, 32>}, {transform_indices = @transform_10, window_bounds = array<i64: 1, 32, 64>}, {transform_indices = @transform_11, window_bounds = array<i64: 1, 1, 64>}, {transform_indices = @transform_12, window_bounds = array<i64: 1, 64, 32>}, {transform_indices = @transform_13, window_bounds = array<i64: 1, 1, 32>}, {transform_indices = @transform_14, window_bounds = array<i64: 1, 1, 32>}, {transform_indices = @transform_15, window_bounds = array<i64: 1, 1, 32>}, {pipeline_mode = #tpu.pipeline_mode<synchronous>, transform_indices = @transform_16, window_bounds = array<i64: 32, 32>}, {pipeline_mode = #tpu.pipeline_mode<synchronous>, transform_indices = @transform_17, window_bounds = array<i64: 1, 32>}, {pipeline_mode = #tpu.pipeline_mode<synchronous>, transform_indices = @transform_18, window_bounds = array<i64: 32, 128>}, {pipeline_mode = #tpu.pipeline_mode<synchronous>, transform_indices = @transform_19, window_bounds = array<i64: 1, 128>}, {pipeline_mode = #tpu.pipeline_mode<synchronous>, transform_indices = @transform_20, window_bounds = array<i64: 2, 128>}]} {
    %c0_i32 = arith.constant 0 : i32
    %0 = arith.cmpi eq, %arg0, %c0_i32 : i32
    %1 = arith.extui %0 : i1 to i32
    %c0_i32_0 = arith.constant 0 : i32
    %2 = arith.cmpi ne, %1, %c0_i32_0 : i32
    scf.if %2 {
      %c0_107 = arith.constant 0 : index
      %c0_108 = arith.constant 0 : index
      %252 = vector.load %arg1[%c0_107, %c0_108] : memref<16x32xf32, #tpu.memory_space<vmem>>, vector<16x32xf32>
      %c0_109 = arith.constant 0 : index
      %c0_110 = arith.constant 0 : index
      %253 = vector.load %arg3[%c0_109, %c0_110] : memref<1x32xf32, #tpu.memory_space<vmem>>, vector<1x32xf32>
      %c0_111 = arith.constant 0 : index
      %c0_112 = arith.constant 0 : index
      %254 = vector.load %arg4[%c0_111, %c0_112] : memref<1x32xf32, #tpu.memory_space<vmem>>, vector<1x32xf32>
      %cst_113 = arith.constant dense<0.000000e+00> : vector<16xf32>
      %255 = vector.multi_reduction <add>, %252, %cst_113 [1] : vector<16x32xf32> to vector<16xf32>
      %256 = vector.shape_cast %255 : vector<16xf32> to vector<16x1xf32>
      %cst_114 = arith.constant 3.200000e+01 : f32
      %257 = vector.broadcast %cst_114 : f32 to vector<16x1xf32>
      %258 = arith.divf %256, %257 : vector<16x1xf32>
      %259 = vector.broadcast %258 : vector<16x1xf32> to vector<16x32xf32>
      %260 = arith.subf %252, %259 : vector<16x32xf32>
      %261 = arith.mulf %260, %260 : vector<16x32xf32>
      %cst_115 = arith.constant dense<0.000000e+00> : vector<16xf32>
      %262 = vector.multi_reduction <add>, %261, %cst_115 [1] : vector<16x32xf32> to vector<16xf32>
      %263 = vector.shape_cast %262 : vector<16xf32> to vector<16x1xf32>
      %cst_116 = arith.constant 3.200000e+01 : f32
      %264 = vector.broadcast %cst_116 : f32 to vector<16x1xf32>
      %265 = arith.divf %263, %264 : vector<16x1xf32>
      %cst_117 = arith.constant 9.99999996E-13 : f32
      %266 = vector.broadcast %cst_117 : f32 to vector<16x1xf32>
      %267 = arith.addf %265, %266 : vector<16x1xf32>
      %268 = math.rsqrt %267 : vector<16x1xf32>
      %269 = vector.broadcast %268 : vector<16x1xf32> to vector<16x32xf32>
      %270 = arith.mulf %260, %269 : vector<16x32xf32>
      %271 = vector.broadcast %253 : vector<1x32xf32> to vector<16x32xf32>
      %272 = arith.mulf %270, %271 : vector<16x32xf32>
      %273 = vector.broadcast %254 : vector<1x32xf32> to vector<16x32xf32>
      %274 = arith.addf %272, %273 : vector<16x32xf32>
      %c0_118 = arith.constant 0 : index
      %c0_119 = arith.constant 0 : index
      %275 = vector.load %arg22[%c0_118, %c0_119] : memref<16x32xf32, #tpu.memory_space<vmem>>, vector<16x32xf32>
      tpu.vector_store %arg22[%c0_118, %c0_119], %274 {strides = array<i32>} : memref<16x32xf32, #tpu.memory_space<vmem>>, vector<16x32xf32>,
    } else {
    }
    %c0 = arith.constant 0 : index
    %c0_1 = arith.constant 0 : index
    %3 = vector.load %arg22[%c0, %c0_1] : memref<16x32xf32, #tpu.memory_space<vmem>>, vector<16x32xf32>
    %c0_2 = arith.constant 0 : index
    %c0_3 = arith.constant 0 : index
    %c0_4 = arith.constant 0 : index
    %4 = vector.load %arg5[%c0_2, %c0_3, %c0_4] : memref<1x32x96xf32, #tpu.memory_space<vmem>>, vector<1x32x96xf32>
    %5 = vector.shape_cast %4 : vector<1x32x96xf32> to vector<32x96xf32>
    %cst = arith.constant dense<0.000000e+00> : vector<16x96xf32>
    %6 = tpu.matmul %3, %5, %cst {dimension_numbers = #tpu.dot_dimension_numbers<[1], [0], [0], [1], [0, 0, 1, 1], [], []>} : vector<16x32xf32>, vector<32x96xf32>, vector<16x96xf32> -> vector<16x96xf32>
    %c0_5 = arith.constant 0 : index
    %c0_6 = arith.constant 0 : index
    %c0_7 = arith.constant 0 : index
    %7 = vector.load %arg6[%c0_5, %c0_6, %c0_7] : memref<1x1x96xf32, #tpu.memory_space<vmem>>, vector<1x1x96xf32>
    %8 = vector.shape_cast %7 : vector<1x1x96xf32> to vector<1x96xf32>
    %9 = vector.broadcast %8 : vector<1x96xf32> to vector<16x96xf32>
    %10 = arith.addf %6, %9 : vector<16x96xf32>
    %11 = vector.extract_strided_slice %10 {offsets = [0, 0], sizes = [16, 32], strides = [1, 1]} : vector<16x96xf32> to vector<16x32xf32>
    %12 = vector.extract_strided_slice %10 {offsets = [0, 32], sizes = [16, 32], strides = [1, 1]} : vector<16x96xf32> to vector<16x32xf32>
    %13 = vector.extract_strided_slice %10 {offsets = [0, 64], sizes = [16, 32], strides = [1, 1]} : vector<16x96xf32> to vector<16x32xf32>
    %c0_8 = arith.constant 0 : index
    %c0_9 = arith.constant 0 : index
    %14 = vector.load %arg2[%c0_8, %c0_9] : memref<2x8xf32, #tpu.memory_space<vmem>>, vector<1x8xf32>
    %15 = vector.extract_strided_slice %11 {offsets = [0, 0], sizes = [8, 8], strides = [1, 1]} : vector<16x32xf32> to vector<8x8xf32>
    %16 = vector.extract_strided_slice %12 {offsets = [0, 0], sizes = [8, 8], strides = [1, 1]} : vector<16x32xf32> to vector<8x8xf32>
    %17 = vector.extract_strided_slice %13 {offsets = [0, 0], sizes = [8, 8], strides = [1, 1]} : vector<16x32xf32> to vector<8x8xf32>
    %18 = tpu.transpose %16, [1, 0] : vector<8x8xf32> -> vector<8x8xf32>
    %cst_10 = arith.constant dense<0.000000e+00> : vector<8x8xf32>
    %19 = tpu.matmul %15, %18, %cst_10 {dimension_numbers = #tpu.dot_dimension_numbers<[1], [0], [0], [1], [0, 0, 1, 1], [], []>} : vector<8x8xf32>, vector<8x8xf32>, vector<8x8xf32> -> vector<8x8xf32>
    %20 = vector.broadcast %14 : vector<1x8xf32> to vector<8x8xf32>
    %21 = arith.addf %19, %20 : vector<8x8xf32>
    %cst_11 = arith.constant dense<0xFF800000> : vector<8xf32>
    %22 = vector.multi_reduction <maximumf>, %21, %cst_11 [1] : vector<8x8xf32> to vector<8xf32>
    %23 = vector.shape_cast %22 : vector<8xf32> to vector<8x1xf32>
    %24 = vector.broadcast %23 : vector<8x1xf32> to vector<8x8xf32>
    %25 = arith.subf %21, %24 : vector<8x8xf32>
    %26 = math.exp %25 : vector<8x8xf32>
    %cst_12 = arith.constant dense<0.000000e+00> : vector<8xf32>
    %27 = vector.multi_reduction <add>, %26, %cst_12 [1] : vector<8x8xf32> to vector<8xf32>
    %28 = vector.shape_cast %27 : vector<8xf32> to vector<8x1xf32>
    %29 = tpu.reciprocal %28 {approx = true} : vector<8x1xf32> -> vector<8x1xf32>
    %30 = vector.broadcast %29 : vector<8x1xf32> to vector<8x8xf32>
    %31 = arith.mulf %26, %30 : vector<8x8xf32>
    %cst_13 = arith.constant dense<0.000000e+00> : vector<8x8xf32>
    %32 = tpu.matmul %31, %17, %cst_13 {dimension_numbers = #tpu.dot_dimension_numbers<[1], [0], [0], [1], [0, 0, 1, 1], [], []>} : vector<8x8xf32>, vector<8x8xf32>, vector<8x8xf32> -> vector<8x8xf32>
    %c0_14 = arith.constant 0 : index
    %c0_15 = arith.constant 0 : index
    %33 = vector.load %arg23[%c0_14, %c0_15] : memref<16x32xf32, #tpu.memory_space<vmem>>, vector<8x8xf32>
    tpu.vector_store %arg23[%c0_14, %c0_15], %32 {strides = array<i32>} : memref<16x32xf32, #tpu.memory_space<vmem>>, vector<8x8xf32>,
    %34 = vector.extract_strided_slice %11 {offsets = [0, 8], sizes = [8, 8], strides = [1, 1]} : vector<16x32xf32> to vector<8x8xf32>
    %35 = vector.extract_strided_slice %12 {offsets = [0, 8], sizes = [8, 8], strides = [1, 1]} : vector<16x32xf32> to vector<8x8xf32>
    %36 = vector.extract_strided_slice %13 {offsets = [0, 8], sizes = [8, 8], strides = [1, 1]} : vector<16x32xf32> to vector<8x8xf32>
    %37 = tpu.transpose %35, [1, 0] : vector<8x8xf32> -> vector<8x8xf32>
    %cst_16 = arith.constant dense<0.000000e+00> : vector<8x8xf32>
    %38 = tpu.matmul %34, %37, %cst_16 {dimension_numbers = #tpu.dot_dimension_numbers<[1], [0], [0], [1], [0, 0, 1, 1], [], []>} : vector<8x8xf32>, vector<8x8xf32>, vector<8x8xf32> -> vector<8x8xf32>
    %39 = vector.broadcast %14 : vector<1x8xf32> to vector<8x8xf32>
    %40 = arith.addf %38, %39 : vector<8x8xf32>
    %cst_17 = arith.constant dense<0xFF800000> : vector<8xf32>
    %41 = vector.multi_reduction <maximumf>, %40, %cst_17 [1] : vector<8x8xf32> to vector<8xf32>
    %42 = vector.shape_cast %41 : vector<8xf32> to vector<8x1xf32>
    %43 = vector.broadcast %42 : vector<8x1xf32> to vector<8x8xf32>
    %44 = arith.subf %40, %43 : vector<8x8xf32>
    %45 = math.exp %44 : vector<8x8xf32>
    %cst_18 = arith.constant dense<0.000000e+00> : vector<8xf32>
    %46 = vector.multi_reduction <add>, %45, %cst_18 [1] : vector<8x8xf32> to vector<8xf32>
    %47 = vector.shape_cast %46 : vector<8xf32> to vector<8x1xf32>
    %48 = tpu.reciprocal %47 {approx = true} : vector<8x1xf32> -> vector<8x1xf32>
    %49 = vector.broadcast %48 : vector<8x1xf32> to vector<8x8xf32>
    %50 = arith.mulf %45, %49 : vector<8x8xf32>
    %cst_19 = arith.constant dense<0.000000e+00> : vector<8x8xf32>
    %51 = tpu.matmul %50, %36, %cst_19 {dimension_numbers = #tpu.dot_dimension_numbers<[1], [0], [0], [1], [0, 0, 1, 1], [], []>} : vector<8x8xf32>, vector<8x8xf32>, vector<8x8xf32> -> vector<8x8xf32>
    %c0_20 = arith.constant 0 : index
    %c8 = arith.constant 8 : index
    %52 = vector.load %arg23[%c0_20, %c8] : memref<16x32xf32, #tpu.memory_space<vmem>>, vector<8x8xf32>
    tpu.vector_store %arg23[%c0_20, %c8], %51 {strides = array<i32>} : memref<16x32xf32, #tpu.memory_space<vmem>>, vector<8x8xf32>,
    %53 = vector.extract_strided_slice %11 {offsets = [0, 16], sizes = [8, 8], strides = [1, 1]} : vector<16x32xf32> to vector<8x8xf32>
    %54 = vector.extract_strided_slice %12 {offsets = [0, 16], sizes = [8, 8], strides = [1, 1]} : vector<16x32xf32> to vector<8x8xf32>
    %55 = vector.extract_strided_slice %13 {offsets = [0, 16], sizes = [8, 8], strides = [1, 1]} : vector<16x32xf32> to vector<8x8xf32>
    %56 = tpu.transpose %54, [1, 0] : vector<8x8xf32> -> vector<8x8xf32>
    %cst_21 = arith.constant dense<0.000000e+00> : vector<8x8xf32>
    %57 = tpu.matmul %53, %56, %cst_21 {dimension_numbers = #tpu.dot_dimension_numbers<[1], [0], [0], [1], [0, 0, 1, 1], [], []>} : vector<8x8xf32>, vector<8x8xf32>, vector<8x8xf32> -> vector<8x8xf32>
    %58 = vector.broadcast %14 : vector<1x8xf32> to vector<8x8xf32>
    %59 = arith.addf %57, %58 : vector<8x8xf32>
    %cst_22 = arith.constant dense<0xFF800000> : vector<8xf32>
    %60 = vector.multi_reduction <maximumf>, %59, %cst_22 [1] : vector<8x8xf32> to vector<8xf32>
    %61 = vector.shape_cast %60 : vector<8xf32> to vector<8x1xf32>
    %62 = vector.broadcast %61 : vector<8x1xf32> to vector<8x8xf32>
    %63 = arith.subf %59, %62 : vector<8x8xf32>
    %64 = math.exp %63 : vector<8x8xf32>
    %cst_23 = arith.constant dense<0.000000e+00> : vector<8xf32>
    %65 = vector.multi_reduction <add>, %64, %cst_23 [1] : vector<8x8xf32> to vector<8xf32>
    %66 = vector.shape_cast %65 : vector<8xf32> to vector<8x1xf32>
    %67 = tpu.reciprocal %66 {approx = true} : vector<8x1xf32> -> vector<8x1xf32>
    %68 = vector.broadcast %67 : vector<8x1xf32> to vector<8x8xf32>
    %69 = arith.mulf %64, %68 : vector<8x8xf32>
    %cst_24 = arith.constant dense<0.000000e+00> : vector<8x8xf32>
    %70 = tpu.matmul %69, %55, %cst_24 {dimension_numbers = #tpu.dot_dimension_numbers<[1], [0], [0], [1], [0, 0, 1, 1], [], []>} : vector<8x8xf32>, vector<8x8xf32>, vector<8x8xf32> -> vector<8x8xf32>
    %c0_25 = arith.constant 0 : index
    %c16 = arith.constant 16 : index
    %71 = vector.load %arg23[%c0_25, %c16] : memref<16x32xf32, #tpu.memory_space<vmem>>, vector<8x8xf32>
    tpu.vector_store %arg23[%c0_25, %c16], %70 {strides = array<i32>} : memref<16x32xf32, #tpu.memory_space<vmem>>, vector<8x8xf32>,
    %72 = vector.extract_strided_slice %11 {offsets = [0, 24], sizes = [8, 8], strides = [1, 1]} : vector<16x32xf32> to vector<8x8xf32>
    %73 = vector.extract_strided_slice %12 {offsets = [0, 24], sizes = [8, 8], strides = [1, 1]} : vector<16x32xf32> to vector<8x8xf32>
    %74 = vector.extract_strided_slice %13 {offsets = [0, 24], sizes = [8, 8], strides = [1, 1]} : vector<16x32xf32> to vector<8x8xf32>
    %75 = tpu.transpose %73, [1, 0] : vector<8x8xf32> -> vector<8x8xf32>
    %cst_26 = arith.constant dense<0.000000e+00> : vector<8x8xf32>
    %76 = tpu.matmul %72, %75, %cst_26 {dimension_numbers = #tpu.dot_dimension_numbers<[1], [0], [0], [1], [0, 0, 1, 1], [], []>} : vector<8x8xf32>, vector<8x8xf32>, vector<8x8xf32> -> vector<8x8xf32>
    %77 = vector.broadcast %14 : vector<1x8xf32> to vector<8x8xf32>
    %78 = arith.addf %76, %77 : vector<8x8xf32>
    %cst_27 = arith.constant dense<0xFF800000> : vector<8xf32>
    %79 = vector.multi_reduction <maximumf>, %78, %cst_27 [1] : vector<8x8xf32> to vector<8xf32>
    %80 = vector.shape_cast %79 : vector<8xf32> to vector<8x1xf32>
    %81 = vector.broadcast %80 : vector<8x1xf32> to vector<8x8xf32>
    %82 = arith.subf %78, %81 : vector<8x8xf32>
    %83 = math.exp %82 : vector<8x8xf32>
    %cst_28 = arith.constant dense<0.000000e+00> : vector<8xf32>
    %84 = vector.multi_reduction <add>, %83, %cst_28 [1] : vector<8x8xf32> to vector<8xf32>
    %85 = vector.shape_cast %84 : vector<8xf32> to vector<8x1xf32>
    %86 = tpu.reciprocal %85 {approx = true} : vector<8x1xf32> -> vector<8x1xf32>
    %87 = vector.broadcast %86 : vector<8x1xf32> to vector<8x8xf32>
    %88 = arith.mulf %83, %87 : vector<8x8xf32>
    %cst_29 = arith.constant dense<0.000000e+00> : vector<8x8xf32>
    %89 = tpu.matmul %88, %74, %cst_29 {dimension_numbers = #tpu.dot_dimension_numbers<[1], [0], [0], [1], [0, 0, 1, 1], [], []>} : vector<8x8xf32>, vector<8x8xf32>, vector<8x8xf32> -> vector<8x8xf32>
    %c0_30 = arith.constant 0 : index
    %c24 = arith.constant 24 : index
    %90 = vector.load %arg23[%c0_30, %c24] : memref<16x32xf32, #tpu.memory_space<vmem>>, vector<8x8xf32>
    tpu.vector_store %arg23[%c0_30, %c24], %89 {strides = array<i32>} : memref<16x32xf32, #tpu.memory_space<vmem>>, vector<8x8xf32>,
    %c1 = arith.constant 1 : index
    %c0_31 = arith.constant 0 : index
    %91 = vector.load %arg2[%c1, %c0_31] : memref<2x8xf32, #tpu.memory_space<vmem>>, vector<1x8xf32>
    %92 = vector.extract_strided_slice %11 {offsets = [8, 0], sizes = [8, 8], strides = [1, 1]} : vector<16x32xf32> to vector<8x8xf32>
    %93 = vector.extract_strided_slice %12 {offsets = [8, 0], sizes = [8, 8], strides = [1, 1]} : vector<16x32xf32> to vector<8x8xf32>
    %94 = vector.extract_strided_slice %13 {offsets = [8, 0], sizes = [8, 8], strides = [1, 1]} : vector<16x32xf32> to vector<8x8xf32>
    %95 = tpu.transpose %93, [1, 0] : vector<8x8xf32> -> vector<8x8xf32>
    %cst_32 = arith.constant dense<0.000000e+00> : vector<8x8xf32>
    %96 = tpu.matmul %92, %95, %cst_32 {dimension_numbers = #tpu.dot_dimension_numbers<[1], [0], [0], [1], [0, 0, 1, 1], [], []>} : vector<8x8xf32>, vector<8x8xf32>, vector<8x8xf32> -> vector<8x8xf32>
    %97 = vector.broadcast %91 : vector<1x8xf32> to vector<8x8xf32>
    %98 = arith.addf %96, %97 : vector<8x8xf32>
    %cst_33 = arith.constant dense<0xFF800000> : vector<8xf32>
    %99 = vector.multi_reduction <maximumf>, %98, %cst_33 [1] : vector<8x8xf32> to vector<8xf32>
    %100 = vector.shape_cast %99 : vector<8xf32> to vector<8x1xf32>
    %101 = vector.broadcast %100 : vector<8x1xf32> to vector<8x8xf32>
    %102 = arith.subf %98, %101 : vector<8x8xf32>
    %103 = math.exp %102 : vector<8x8xf32>
    %cst_34 = arith.constant dense<0.000000e+00> : vector<8xf32>
    %104 = vector.multi_reduction <add>, %103, %cst_34 [1] : vector<8x8xf32> to vector<8xf32>
    %105 = vector.shape_cast %104 : vector<8xf32> to vector<8x1xf32>
    %106 = tpu.reciprocal %105 {approx = true} : vector<8x1xf32> -> vector<8x1xf32>
    %107 = vector.broadcast %106 : vector<8x1xf32> to vector<8x8xf32>
    %108 = arith.mulf %103, %107 : vector<8x8xf32>
    %cst_35 = arith.constant dense<0.000000e+00> : vector<8x8xf32>
    %109 = tpu.matmul %108, %94, %cst_35 {dimension_numbers = #tpu.dot_dimension_numbers<[1], [0], [0], [1], [0, 0, 1, 1], [], []>} : vector<8x8xf32>, vector<8x8xf32>, vector<8x8xf32> -> vector<8x8xf32>
    %c8_36 = arith.constant 8 : index
    %c0_37 = arith.constant 0 : index
    %110 = vector.load %arg23[%c8_36, %c0_37] : memref<16x32xf32, #tpu.memory_space<vmem>>, vector<8x8xf32>
    tpu.vector_store %arg23[%c8_36, %c0_37], %109 {strides = array<i32>} : memref<16x32xf32, #tpu.memory_space<vmem>>, vector<8x8xf32>,
    %111 = vector.extract_strided_slice %11 {offsets = [8, 8], sizes = [8, 8], strides = [1, 1]} : vector<16x32xf32> to vector<8x8xf32>
    %112 = vector.extract_strided_slice %12 {offsets = [8, 8], sizes = [8, 8], strides = [1, 1]} : vector<16x32xf32> to vector<8x8xf32>
    %113 = vector.extract_strided_slice %13 {offsets = [8, 8], sizes = [8, 8], strides = [1, 1]} : vector<16x32xf32> to vector<8x8xf32>
    %114 = tpu.transpose %112, [1, 0] : vector<8x8xf32> -> vector<8x8xf32>
    %cst_38 = arith.constant dense<0.000000e+00> : vector<8x8xf32>
    %115 = tpu.matmul %111, %114, %cst_38 {dimension_numbers = #tpu.dot_dimension_numbers<[1], [0], [0], [1], [0, 0, 1, 1], [], []>} : vector<8x8xf32>, vector<8x8xf32>, vector<8x8xf32> -> vector<8x8xf32>
    %116 = vector.broadcast %91 : vector<1x8xf32> to vector<8x8xf32>
    %117 = arith.addf %115, %116 : vector<8x8xf32>
    %cst_39 = arith.constant dense<0xFF800000> : vector<8xf32>
    %118 = vector.multi_reduction <maximumf>, %117, %cst_39 [1] : vector<8x8xf32> to vector<8xf32>
    %119 = vector.shape_cast %118 : vector<8xf32> to vector<8x1xf32>
    %120 = vector.broadcast %119 : vector<8x1xf32> to vector<8x8xf32>
    %121 = arith.subf %117, %120 : vector<8x8xf32>
    %122 = math.exp %121 : vector<8x8xf32>
    %cst_40 = arith.constant dense<0.000000e+00> : vector<8xf32>
    %123 = vector.multi_reduction <add>, %122, %cst_40 [1] : vector<8x8xf32> to vector<8xf32>
    %124 = vector.shape_cast %123 : vector<8xf32> to vector<8x1xf32>
    %125 = tpu.reciprocal %124 {approx = true} : vector<8x1xf32> -> vector<8x1xf32>
    %126 = vector.broadcast %125 : vector<8x1xf32> to vector<8x8xf32>
    %127 = arith.mulf %122, %126 : vector<8x8xf32>
    %cst_41 = arith.constant dense<0.000000e+00> : vector<8x8xf32>
    %128 = tpu.matmul %127, %113, %cst_41 {dimension_numbers = #tpu.dot_dimension_numbers<[1], [0], [0], [1], [0, 0, 1, 1], [], []>} : vector<8x8xf32>, vector<8x8xf32>, vector<8x8xf32> -> vector<8x8xf32>
    %c8_42 = arith.constant 8 : index
    %c8_43 = arith.constant 8 : index
    %129 = vector.load %arg23[%c8_42, %c8_43] : memref<16x32xf32, #tpu.memory_space<vmem>>, vector<8x8xf32>
    tpu.vector_store %arg23[%c8_42, %c8_43], %128 {strides = array<i32>} : memref<16x32xf32, #tpu.memory_space<vmem>>, vector<8x8xf32>,
    %130 = vector.extract_strided_slice %11 {offsets = [8, 16], sizes = [8, 8], strides = [1, 1]} : vector<16x32xf32> to vector<8x8xf32>
    %131 = vector.extract_strided_slice %12 {offsets = [8, 16], sizes = [8, 8], strides = [1, 1]} : vector<16x32xf32> to vector<8x8xf32>
    %132 = vector.extract_strided_slice %13 {offsets = [8, 16], sizes = [8, 8], strides = [1, 1]} : vector<16x32xf32> to vector<8x8xf32>
    %133 = tpu.transpose %131, [1, 0] : vector<8x8xf32> -> vector<8x8xf32>
    %cst_44 = arith.constant dense<0.000000e+00> : vector<8x8xf32>
    %134 = tpu.matmul %130, %133, %cst_44 {dimension_numbers = #tpu.dot_dimension_numbers<[1], [0], [0], [1], [0, 0, 1, 1], [], []>} : vector<8x8xf32>, vector<8x8xf32>, vector<8x8xf32> -> vector<8x8xf32>
    %135 = vector.broadcast %91 : vector<1x8xf32> to vector<8x8xf32>
    %136 = arith.addf %134, %135 : vector<8x8xf32>
    %cst_45 = arith.constant dense<0xFF800000> : vector<8xf32>
    %137 = vector.multi_reduction <maximumf>, %136, %cst_45 [1] : vector<8x8xf32> to vector<8xf32>
    %138 = vector.shape_cast %137 : vector<8xf32> to vector<8x1xf32>
    %139 = vector.broadcast %138 : vector<8x1xf32> to vector<8x8xf32>
    %140 = arith.subf %136, %139 : vector<8x8xf32>
    %141 = math.exp %140 : vector<8x8xf32>
    %cst_46 = arith.constant dense<0.000000e+00> : vector<8xf32>
    %142 = vector.multi_reduction <add>, %141, %cst_46 [1] : vector<8x8xf32> to vector<8xf32>
    %143 = vector.shape_cast %142 : vector<8xf32> to vector<8x1xf32>
    %144 = tpu.reciprocal %143 {approx = true} : vector<8x1xf32> -> vector<8x1xf32>
    %145 = vector.broadcast %144 : vector<8x1xf32> to vector<8x8xf32>
    %146 = arith.mulf %141, %145 : vector<8x8xf32>
    %cst_47 = arith.constant dense<0.000000e+00> : vector<8x8xf32>
    %147 = tpu.matmul %146, %132, %cst_47 {dimension_numbers = #tpu.dot_dimension_numbers<[1], [0], [0], [1], [0, 0, 1, 1], [], []>} : vector<8x8xf32>, vector<8x8xf32>, vector<8x8xf32> -> vector<8x8xf32>
    %c8_48 = arith.constant 8 : index
    %c16_49 = arith.constant 16 : index
    %148 = vector.load %arg23[%c8_48, %c16_49] : memref<16x32xf32, #tpu.memory_space<vmem>>, vector<8x8xf32>
    tpu.vector_store %arg23[%c8_48, %c16_49], %147 {strides = array<i32>} : memref<16x32xf32, #tpu.memory_space<vmem>>, vector<8x8xf32>,
    %149 = vector.extract_strided_slice %11 {offsets = [8, 24], sizes = [8, 8], strides = [1, 1]} : vector<16x32xf32> to vector<8x8xf32>
    %150 = vector.extract_strided_slice %12 {offsets = [8, 24], sizes = [8, 8], strides = [1, 1]} : vector<16x32xf32> to vector<8x8xf32>
    %151 = vector.extract_strided_slice %13 {offsets = [8, 24], sizes = [8, 8], strides = [1, 1]} : vector<16x32xf32> to vector<8x8xf32>
    %152 = tpu.transpose %150, [1, 0] : vector<8x8xf32> -> vector<8x8xf32>
    %cst_50 = arith.constant dense<0.000000e+00> : vector<8x8xf32>
    %153 = tpu.matmul %149, %152, %cst_50 {dimension_numbers = #tpu.dot_dimension_numbers<[1], [0], [0], [1], [0, 0, 1, 1], [], []>} : vector<8x8xf32>, vector<8x8xf32>, vector<8x8xf32> -> vector<8x8xf32>
    %154 = vector.broadcast %91 : vector<1x8xf32> to vector<8x8xf32>
    %155 = arith.addf %153, %154 : vector<8x8xf32>
    %cst_51 = arith.constant dense<0xFF800000> : vector<8xf32>
    %156 = vector.multi_reduction <maximumf>, %155, %cst_51 [1] : vector<8x8xf32> to vector<8xf32>
    %157 = vector.shape_cast %156 : vector<8xf32> to vector<8x1xf32>
    %158 = vector.broadcast %157 : vector<8x1xf32> to vector<8x8xf32>
    %159 = arith.subf %155, %158 : vector<8x8xf32>
    %160 = math.exp %159 : vector<8x8xf32>
    %cst_52 = arith.constant dense<0.000000e+00> : vector<8xf32>
    %161 = vector.multi_reduction <add>, %160, %cst_52 [1] : vector<8x8xf32> to vector<8xf32>
    %162 = vector.shape_cast %161 : vector<8xf32> to vector<8x1xf32>
    %163 = tpu.reciprocal %162 {approx = true} : vector<8x1xf32> -> vector<8x1xf32>
    %164 = vector.broadcast %163 : vector<8x1xf32> to vector<8x8xf32>
    %165 = arith.mulf %160, %164 : vector<8x8xf32>
    %cst_53 = arith.constant dense<0.000000e+00> : vector<8x8xf32>
    %166 = tpu.matmul %165, %151, %cst_53 {dimension_numbers = #tpu.dot_dimension_numbers<[1], [0], [0], [1], [0, 0, 1, 1], [], []>} : vector<8x8xf32>, vector<8x8xf32>, vector<8x8xf32> -> vector<8x8xf32>
    %c8_54 = arith.constant 8 : index
    %c24_55 = arith.constant 24 : index
    %167 = vector.load %arg23[%c8_54, %c24_55] : memref<16x32xf32, #tpu.memory_space<vmem>>, vector<8x8xf32>
    tpu.vector_store %arg23[%c8_54, %c24_55], %166 {strides = array<i32>} : memref<16x32xf32, #tpu.memory_space<vmem>>, vector<8x8xf32>,
    %c0_56 = arith.constant 0 : index
    %c0_57 = arith.constant 0 : index
    %168 = vector.load %arg23[%c0_56, %c0_57] : memref<16x32xf32, #tpu.memory_space<vmem>>, vector<16x32xf32>
    %c0_58 = arith.constant 0 : index
    %c0_59 = arith.constant 0 : index
    %c0_60 = arith.constant 0 : index
    %169 = vector.load %arg7[%c0_58, %c0_59, %c0_60] : memref<1x32x32xf32, #tpu.memory_space<vmem>>, vector<1x32x32xf32>
    %170 = vector.shape_cast %169 : vector<1x32x32xf32> to vector<32x32xf32>
    %cst_61 = arith.constant dense<0.000000e+00> : vector<16x32xf32>
    %171 = tpu.matmul %168, %170, %cst_61 {dimension_numbers = #tpu.dot_dimension_numbers<[1], [0], [0], [1], [0, 0, 1, 1], [], []>} : vector<16x32xf32>, vector<32x32xf32>, vector<16x32xf32> -> vector<16x32xf32>
    %c0_62 = arith.constant 0 : index
    %c0_63 = arith.constant 0 : index
    %c0_64 = arith.constant 0 : index
    %172 = vector.load %arg8[%c0_62, %c0_63, %c0_64] : memref<1x1x32xf32, #tpu.memory_space<vmem>>, vector<1x1x32xf32>
    %173 = vector.shape_cast %172 : vector<1x1x32xf32> to vector<1x32xf32>
    %174 = vector.broadcast %173 : vector<1x32xf32> to vector<16x32xf32>
    %175 = arith.addf %171, %174 : vector<16x32xf32>
    %176 = arith.addf %175, %3 : vector<16x32xf32>
    %c0_65 = arith.constant 0 : index
    %c0_66 = arith.constant 0 : index
    %c0_67 = arith.constant 0 : index
    %177 = vector.load %arg9[%c0_65, %c0_66, %c0_67] : memref<1x1x32xf32, #tpu.memory_space<vmem>>, vector<1x1x32xf32>
    %178 = vector.shape_cast %177 : vector<1x1x32xf32> to vector<1x32xf32>
    %c0_68 = arith.constant 0 : index
    %c0_69 = arith.constant 0 : index
    %c0_70 = arith.constant 0 : index
    %179 = vector.load %arg10[%c0_68, %c0_69, %c0_70] : memref<1x1x32xf32, #tpu.memory_space<vmem>>, vector<1x1x32xf32>
    %180 = vector.shape_cast %179 : vector<1x1x32xf32> to vector<1x32xf32>
    %cst_71 = arith.constant dense<0.000000e+00> : vector<16xf32>
    %181 = vector.multi_reduction <add>, %176, %cst_71 [1] : vector<16x32xf32> to vector<16xf32>
    %182 = vector.shape_cast %181 : vector<16xf32> to vector<16x1xf32>
    %cst_72 = arith.constant 3.200000e+01 : f32
    %183 = vector.broadcast %cst_72 : f32 to vector<16x1xf32>
    %184 = arith.divf %182, %183 : vector<16x1xf32>
    %185 = vector.broadcast %184 : vector<16x1xf32> to vector<16x32xf32>
    %186 = arith.subf %176, %185 : vector<16x32xf32>
    %187 = arith.mulf %186, %186 : vector<16x32xf32>
    %cst_73 = arith.constant dense<0.000000e+00> : vector<16xf32>
    %188 = vector.multi_reduction <add>, %187, %cst_73 [1] : vector<16x32xf32> to vector<16xf32>
    %189 = vector.shape_cast %188 : vector<16xf32> to vector<16x1xf32>
    %cst_74 = arith.constant 3.200000e+01 : f32
    %190 = vector.broadcast %cst_74 : f32 to vector<16x1xf32>
    %191 = arith.divf %189, %190 : vector<16x1xf32>
    %cst_75 = arith.constant 9.99999996E-13 : f32
    %192 = vector.broadcast %cst_75 : f32 to vector<16x1xf32>
    %193 = arith.addf %191, %192 : vector<16x1xf32>
    %194 = math.rsqrt %193 : vector<16x1xf32>
    %195 = vector.broadcast %194 : vector<16x1xf32> to vector<16x32xf32>
    %196 = arith.mulf %186, %195 : vector<16x32xf32>
    %197 = vector.broadcast %178 : vector<1x32xf32> to vector<16x32xf32>
    %198 = arith.mulf %196, %197 : vector<16x32xf32>
    %199 = vector.broadcast %180 : vector<1x32xf32> to vector<16x32xf32>
    %200 = arith.addf %198, %199 : vector<16x32xf32>
    %c0_76 = arith.constant 0 : index
    %c0_77 = arith.constant 0 : index
    %c0_78 = arith.constant 0 : index
    %201 = vector.load %arg11[%c0_76, %c0_77, %c0_78] : memref<1x32x64xf32, #tpu.memory_space<vmem>>, vector<1x32x64xf32>
    %202 = vector.shape_cast %201 : vector<1x32x64xf32> to vector<32x64xf32>
    %cst_79 = arith.constant dense<0.000000e+00> : vector<16x64xf32>
    %203 = tpu.matmul %200, %202, %cst_79 {dimension_numbers = #tpu.dot_dimension_numbers<[1], [0], [0], [1], [0, 0, 1, 1], [], []>} : vector<16x32xf32>, vector<32x64xf32>, vector<16x64xf32> -> vector<16x64xf32>
    %c0_80 = arith.constant 0 : index
    %c0_81 = arith.constant 0 : index
    %c0_82 = arith.constant 0 : index
    %204 = vector.load %arg12[%c0_80, %c0_81, %c0_82] : memref<1x1x64xf32, #tpu.memory_space<vmem>>, vector<1x1x64xf32>
    %205 = vector.shape_cast %204 : vector<1x1x64xf32> to vector<1x64xf32>
    %206 = vector.broadcast %205 : vector<1x64xf32> to vector<16x64xf32>
    %207 = arith.addf %203, %206 : vector<16x64xf32>
    %cst_83 = arith.constant 5.000000e-01 : f32
    %208 = vector.broadcast %cst_83 : f32 to vector<16x64xf32>
    %209 = arith.mulf %208, %207 : vector<16x64xf32>
    %cst_84 = arith.constant 0.707106769 : f32
    %210 = vector.broadcast %cst_84 : f32 to vector<16x64xf32>
    %211 = arith.mulf %207, %210 : vector<16x64xf32>
    %212 = math.erf %211 : vector<16x64xf32>
    %cst_85 = arith.constant 1.000000e+00 : f32
    %213 = vector.broadcast %cst_85 : f32 to vector<16x64xf32>
    %214 = arith.addf %213, %212 : vector<16x64xf32>
    %215 = arith.mulf %209, %214 : vector<16x64xf32>
    %c0_86 = arith.constant 0 : index
    %c0_87 = arith.constant 0 : index
    %c0_88 = arith.constant 0 : index
    %216 = vector.load %arg13[%c0_86, %c0_87, %c0_88] : memref<1x64x32xf32, #tpu.memory_space<vmem>>, vector<1x64x32xf32>
    %217 = vector.shape_cast %216 : vector<1x64x32xf32> to vector<64x32xf32>
    %cst_89 = arith.constant dense<0.000000e+00> : vector<16x32xf32>
    %218 = tpu.matmul %215, %217, %cst_89 {dimension_numbers = #tpu.dot_dimension_numbers<[1], [0], [0], [1], [0, 0, 1, 1], [], []>} : vector<16x64xf32>, vector<64x32xf32>, vector<16x32xf32> -> vector<16x32xf32>
    %c0_90 = arith.constant 0 : index
    %c0_91 = arith.constant 0 : index
    %c0_92 = arith.constant 0 : index
    %219 = vector.load %arg14[%c0_90, %c0_91, %c0_92] : memref<1x1x32xf32, #tpu.memory_space<vmem>>, vector<1x1x32xf32>
    %220 = vector.shape_cast %219 : vector<1x1x32xf32> to vector<1x32xf32>
    %221 = vector.broadcast %220 : vector<1x32xf32> to vector<16x32xf32>
    %222 = arith.addf %218, %221 : vector<16x32xf32>
    %223 = arith.addf %222, %200 : vector<16x32xf32>
    %c0_93 = arith.constant 0 : index
    %c0_94 = arith.constant 0 : index
    %c0_95 = arith.constant 0 : index
    %224 = vector.load %arg15[%c0_93, %c0_94, %c0_95] : memref<1x1x32xf32, #tpu.memory_space<vmem>>, vector<1x1x32xf32>
    %225 = vector.shape_cast %224 : vector<1x1x32xf32> to vector<1x32xf32>
    %c0_96 = arith.constant 0 : index
    %c0_97 = arith.constant 0 : index
    %c0_98 = arith.constant 0 : index
    %226 = vector.load %arg16[%c0_96, %c0_97, %c0_98] : memref<1x1x32xf32, #tpu.memory_space<vmem>>, vector<1x1x32xf32>
    %227 = vector.shape_cast %226 : vector<1x1x32xf32> to vector<1x32xf32>
    %cst_99 = arith.constant dense<0.000000e+00> : vector<16xf32>
    %228 = vector.multi_reduction <add>, %223, %cst_99 [1] : vector<16x32xf32> to vector<16xf32>
    %229 = vector.shape_cast %228 : vector<16xf32> to vector<16x1xf32>
    %cst_100 = arith.constant 3.200000e+01 : f32
    %230 = vector.broadcast %cst_100 : f32 to vector<16x1xf32>
    %231 = arith.divf %229, %230 : vector<16x1xf32>
    %232 = vector.broadcast %231 : vector<16x1xf32> to vector<16x32xf32>
    %233 = arith.subf %223, %232 : vector<16x32xf32>
    %234 = arith.mulf %233, %233 : vector<16x32xf32>
    %cst_101 = arith.constant dense<0.000000e+00> : vector<16xf32>
    %235 = vector.multi_reduction <add>, %234, %cst_101 [1] : vector<16x32xf32> to vector<16xf32>
    %236 = vector.shape_cast %235 : vector<16xf32> to vector<16x1xf32>
    %cst_102 = arith.constant 3.200000e+01 : f32
    %237 = vector.broadcast %cst_102 : f32 to vector<16x1xf32>
    %238 = arith.divf %236, %237 : vector<16x1xf32>
    %cst_103 = arith.constant 9.99999996E-13 : f32
    %239 = vector.broadcast %cst_103 : f32 to vector<16x1xf32>
    %240 = arith.addf %238, %239 : vector<16x1xf32>
    %241 = math.rsqrt %240 : vector<16x1xf32>
    %242 = vector.broadcast %241 : vector<16x1xf32> to vector<16x32xf32>
    %243 = arith.mulf %233, %242 : vector<16x32xf32>
    %244 = vector.broadcast %225 : vector<1x32xf32> to vector<16x32xf32>
    %245 = arith.mulf %243, %244 : vector<16x32xf32>
    %246 = vector.broadcast %227 : vector<1x32xf32> to vector<16x32xf32>
    %247 = arith.addf %245, %246 : vector<16x32xf32>
    %c0_104 = arith.constant 0 : index
    %c0_105 = arith.constant 0 : index
    %248 = vector.load %arg22[%c0_104, %c0_105] : memref<16x32xf32, #tpu.memory_space<vmem>>, vector<16x32xf32>
    tpu.vector_store %arg22[%c0_104, %c0_105], %247 {strides = array<i32>} : memref<16x32xf32, #tpu.memory_space<vmem>>, vector<16x32xf32>,
    %c1_i32 = arith.constant 1 : i32
    %249 = arith.cmpi eq, %arg0, %c1_i32 : i32
    %250 = arith.extui %249 : i1 to i32
    %c0_i32_106 = arith.constant 0 : i32
    %251 = arith.cmpi ne, %250, %c0_i32_106 : i32
    scf.if %251 {
      %252 = vector.extract_strided_slice %247 {offsets = [0, 0], sizes = [1, 32], strides = [1, 1]} : vector<16x32xf32> to vector<1x32xf32>
      %c0_107 = arith.constant 0 : index
      %c0_108 = arith.constant 0 : index
      %253 = vector.load %arg23[%c0_107, %c0_108] : memref<16x32xf32, #tpu.memory_space<vmem>>, vector<1x32xf32>
      tpu.vector_store %arg23[%c0_107, %c0_108], %252 {strides = array<i32>} : memref<16x32xf32, #tpu.memory_space<vmem>>, vector<1x32xf32>,
      %254 = vector.extract_strided_slice %247 {offsets = [8, 0], sizes = [1, 32], strides = [1, 1]} : vector<16x32xf32> to vector<1x32xf32>
      %c1_109 = arith.constant 1 : index
      %c0_110 = arith.constant 0 : index
      %255 = vector.load %arg23[%c1_109, %c0_110] : memref<16x32xf32, #tpu.memory_space<vmem>>, vector<1x32xf32>
      tpu.vector_store %arg23[%c1_109, %c0_110], %254 {strides = array<i32>} : memref<16x32xf32, #tpu.memory_space<vmem>>, vector<1x32xf32>,
      %c0_111 = arith.constant 0 : index
      %c0_112 = arith.constant 0 : index
      %256 = vector.load %arg23[%c0_111, %c0_112] : memref<16x32xf32, #tpu.memory_space<vmem>>, vector<2x32xf32>
      %c0_113 = arith.constant 0 : index
      %c0_114 = arith.constant 0 : index
      %257 = vector.load %arg17[%c0_113, %c0_114] : memref<32x32xf32, #tpu.memory_space<vmem>>, vector<32x32xf32>
      %cst_115 = arith.constant dense<0.000000e+00> : vector<2x32xf32>
      %258 = tpu.matmul %256, %257, %cst_115 {dimension_numbers = #tpu.dot_dimension_numbers<[1], [0], [0], [1], [0, 0, 1, 1], [], []>} : vector<2x32xf32>, vector<32x32xf32>, vector<2x32xf32> -> vector<2x32xf32>
      %c0_116 = arith.constant 0 : index
      %c0_117 = arith.constant 0 : index
      %259 = vector.load %arg18[%c0_116, %c0_117] : memref<1x32xf32, #tpu.memory_space<vmem>>, vector<1x32xf32>
      %260 = vector.broadcast %259 : vector<1x32xf32> to vector<2x32xf32>
      %261 = arith.addf %258, %260 : vector<2x32xf32>
      %262 = math.tanh %261 : vector<2x32xf32>
      %c0_118 = arith.constant 0 : index
      %c0_119 = arith.constant 0 : index
      %263 = vector.load %arg19[%c0_118, %c0_119] : memref<32x128xf32, #tpu.memory_space<vmem>>, vector<32x128xf32>
      %cst_120 = arith.constant dense<0.000000e+00> : vector<2x128xf32>
      %264 = tpu.matmul %262, %263, %cst_120 {dimension_numbers = #tpu.dot_dimension_numbers<[1], [0], [0], [1], [0, 0, 1, 1], [], []>} : vector<2x32xf32>, vector<32x128xf32>, vector<2x128xf32> -> vector<2x128xf32>
      %c0_121 = arith.constant 0 : index
      %c0_122 = arith.constant 0 : index
      %265 = vector.load %arg20[%c0_121, %c0_122] : memref<1x128xf32, #tpu.memory_space<vmem>>, vector<1x128xf32>
      %266 = vector.broadcast %265 : vector<1x128xf32> to vector<2x128xf32>
      %267 = arith.addf %264, %266 : vector<2x128xf32>
      %c0_123 = arith.constant 0 : index
      %c0_124 = arith.constant 0 : index
      %268 = vector.load %arg21[%c0_123, %c0_124] : memref<2x128xf32, #tpu.memory_space<vmem>>, vector<2x128xf32>
      tpu.vector_store %arg21[%c0_123, %c0_124], %267 {strides = array<i32>} : memref<2x128xf32, #tpu.memory_space<vmem>>, vector<2x128xf32>,
    } else {
    }
    return
  }
  func.func @transform_0(%arg0: i32) -> (i32, i32) {
    %c0_i32 = arith.constant 0 : i32
    %c0_i32_0 = arith.constant 0 : i32
    %c0_i32_1 = arith.constant 0 : i32
    return %c0_i32, %c0_i32_0 : i32, i32
  }
  func.func @transform_1(%arg0: i32) -> (i32, i32) {
    %c0_i32 = arith.constant 0 : i32
    %c0_i32_0 = arith.constant 0 : i32
    %c0_i32_1 = arith.constant 0 : i32
    return %c0_i32, %c0_i32_0 : i32, i32
  }
  func.func @transform_2(%arg0: i32) -> (i32, i32) {
    %c0_i32 = arith.constant 0 : i32
    %c0_i32_0 = arith.constant 0 : i32
    %c0_i32_1 = arith.constant 0 : i32
    return %c0_i32, %c0_i32_0 : i32, i32
  }
  func.func @transform_3(%arg0: i32) -> (i32, i32) {
    %c0_i32 = arith.constant 0 : i32
    %c0_i32_0 = arith.constant 0 : i32
    %c0_i32_1 = arith.constant 0 : i32
    return %c0_i32, %c0_i32_0 : i32, i32
  }
  func.func @transform_4(%arg0: i32) -> (i32, i32, i32) {
    %c0_i32 = arith.constant 0 : i32
    %c0_i32_0 = arith.constant 0 : i32
    %c0_i32_1 = arith.constant 0 : i32
    return %arg0, %c0_i32, %c0_i32_0 : i32, i32, i32
  }
  func.func @transform_5(%arg0: i32) -> (i32, i32, i32) {
    %c0_i32 = arith.constant 0 : i32
    %c0_i32_0 = arith.constant 0 : i32
    %c0_i32_1 = arith.constant 0 : i32
    return %arg0, %c0_i32, %c0_i32_0 : i32, i32, i32
  }
  func.func @transform_6(%arg0: i32) -> (i32, i32, i32) {
    %c0_i32 = arith.constant 0 : i32
    %c0_i32_0 = arith.constant 0 : i32
    %c0_i32_1 = arith.constant 0 : i32
    return %arg0, %c0_i32, %c0_i32_0 : i32, i32, i32
  }
  func.func @transform_7(%arg0: i32) -> (i32, i32, i32) {
    %c0_i32 = arith.constant 0 : i32
    %c0_i32_0 = arith.constant 0 : i32
    %c0_i32_1 = arith.constant 0 : i32
    return %arg0, %c0_i32, %c0_i32_0 : i32, i32, i32
  }
  func.func @transform_8(%arg0: i32) -> (i32, i32, i32) {
    %c0_i32 = arith.constant 0 : i32
    %c0_i32_0 = arith.constant 0 : i32
    %c0_i32_1 = arith.constant 0 : i32
    return %arg0, %c0_i32, %c0_i32_0 : i32, i32, i32
  }
  func.func @transform_9(%arg0: i32) -> (i32, i32, i32) {
    %c0_i32 = arith.constant 0 : i32
    %c0_i32_0 = arith.constant 0 : i32
    %c0_i32_1 = arith.constant 0 : i32
    return %arg0, %c0_i32, %c0_i32_0 : i32, i32, i32
  }
  func.func @transform_10(%arg0: i32) -> (i32, i32, i32) {
    %c0_i32 = arith.constant 0 : i32
    %c0_i32_0 = arith.constant 0 : i32
    %c0_i32_1 = arith.constant 0 : i32
    return %arg0, %c0_i32, %c0_i32_0 : i32, i32, i32
  }
  func.func @transform_11(%arg0: i32) -> (i32, i32, i32) {
    %c0_i32 = arith.constant 0 : i32
    %c0_i32_0 = arith.constant 0 : i32
    %c0_i32_1 = arith.constant 0 : i32
    return %arg0, %c0_i32, %c0_i32_0 : i32, i32, i32
  }
  func.func @transform_12(%arg0: i32) -> (i32, i32, i32) {
    %c0_i32 = arith.constant 0 : i32
    %c0_i32_0 = arith.constant 0 : i32
    %c0_i32_1 = arith.constant 0 : i32
    return %arg0, %c0_i32, %c0_i32_0 : i32, i32, i32
  }
  func.func @transform_13(%arg0: i32) -> (i32, i32, i32) {
    %c0_i32 = arith.constant 0 : i32
    %c0_i32_0 = arith.constant 0 : i32
    %c0_i32_1 = arith.constant 0 : i32
    return %arg0, %c0_i32, %c0_i32_0 : i32, i32, i32
  }
  func.func @transform_14(%arg0: i32) -> (i32, i32, i32) {
    %c0_i32 = arith.constant 0 : i32
    %c0_i32_0 = arith.constant 0 : i32
    %c0_i32_1 = arith.constant 0 : i32
    return %arg0, %c0_i32, %c0_i32_0 : i32, i32, i32
  }
  func.func @transform_15(%arg0: i32) -> (i32, i32, i32) {
    %c0_i32 = arith.constant 0 : i32
    %c0_i32_0 = arith.constant 0 : i32
    %c0_i32_1 = arith.constant 0 : i32
    return %arg0, %c0_i32, %c0_i32_0 : i32, i32, i32
  }
  func.func @transform_16(%arg0: i32) -> (i32, i32) {
    %c0_i32 = arith.constant 0 : i32
    %c0_i32_0 = arith.constant 0 : i32
    %c0_i32_1 = arith.constant 0 : i32
    return %c0_i32, %c0_i32_0 : i32, i32
  }
  func.func @transform_17(%arg0: i32) -> (i32, i32) {
    %c0_i32 = arith.constant 0 : i32
    %c0_i32_0 = arith.constant 0 : i32
    %c0_i32_1 = arith.constant 0 : i32
    return %c0_i32, %c0_i32_0 : i32, i32
  }
  func.func @transform_18(%arg0: i32) -> (i32, i32) {
    %c0_i32 = arith.constant 0 : i32
    %c0_i32_0 = arith.constant 0 : i32
    %c0_i32_1 = arith.constant 0 : i32
    return %c0_i32, %c0_i32_0 : i32, i32
  }
  func.func @transform_19(%arg0: i32) -> (i32, i32) {
    %c0_i32 = arith.constant 0 : i32
    %c0_i32_0 = arith.constant 0 : i32
    %c0_i32_1 = arith.constant 0 : i32
    return %c0_i32, %c0_i32_0 : i32, i32
  }
  func.func @transform_20(%arg0: i32) -> (i32, i32) {
    %c0_i32 = arith.constant 0 : i32
    %c0_i32_0 = arith.constant 0 : i32
    %c0_i32_1 = arith.constant 0 : i32
    return %c0_i32, %c0_i32_0 : i32, i32
  }
}

</mosaic_0001>

<bundles_post_ra>
// kernel: tpu_custom_call.1
= control target key start
LH: loop header
LB: loop body
LE: loop exit
PB: predicated region body
PF: predicated region fallthrough
CT: control target
= control target key end

     0   :  { %s5186_s0 = inlined_call_operand.hbm [shape: f32[16,32], index: 0, kind: input, shape index: {}]   ;;  %s5187_s1 = inlined_call_operand.hbm [shape: f32[2,8], index: 1, kind: input, shape index: {}]   ;;  %s5188_s2 = inlined_call_operand.hbm [shape: f32[1,32], index: 2, kind: input, shape index: {}]   ;;  %s5189_s3 = inlined_call_operand.hbm [shape: f32[1,32], index: 3, kind: input, shape index: {}]   ;;  %s5190_s4 = inlined_call_operand.vmem [shape: f32[2,32,96], index: 4, kind: input, shape index: {}]   ;;  %s5191_s5 = inlined_call_operand.hbm [shape: f32[2,1,96], index: 5, kind: input, shape index: {}]   ;;  %s5192_s6 = inlined_call_operand.vmem [shape: f32[2,32,32], index: 6, kind: input, shape index: {}]   ;;  %s5193_s7 = inlined_call_operand.hbm [shape: f32[2,1,32], index: 7, kind: input, shape index: {}]   ;;  %s5194_s8 = inlined_call_operand.hbm [shape: f32[2,1,32], index: 8, kind: input, shape index: {}]   ;;  %s5195_s9 = inlined_call_operand.hbm [shape: f32[2,1,32], index: 9, kind: input, shape index: {}]   ;;  %s5196_s10 = inlined_call_operand.vmem [shape: f32[2,32,64], index: 10, kind: input, shape index: {}]   ;;  %s5197_s11 = inlined_call_operand.hbm [shape: f32[2,1,64], index: 11, kind: input, shape index: {}]   ;;  %s5198_s12 = inlined_call_operand.vmem [shape: f32[2,64,32], index: 12, kind: input, shape index: {}]   ;;  %s5199_s13 = inlined_call_operand.hbm [shape: f32[2,1,32], index: 13, kind: input, shape index: {}]   ;;  %s5200_s14 = inlined_call_operand.hbm [shape: f32[2,1,32], index: 14, kind: input, shape index: {}]   ;;  %s5201_s15 = inlined_call_operand.hbm [shape: f32[2,1,32], index: 15, kind: input, shape index: {}]   ;;  %s5202_s16 = inlined_call_operand.hbm [shape: f32[32,32], index: 16, kind: input, shape index: {}]   ;;  %s5203_s17 = inlined_call_operand.hbm [shape: f32[1,32], index: 17, kind: input, shape index: {}]   ;;  %s5204_s18 = inlined_call_operand.vmem [shape: f32[32,128], index: 18, kind: input, shape index: {}]   ;;  %s5205_s19 = inlined_call_operand.hbm [shape: f32[1,128], index: 19, kind: input, shape index: {}]   ;;  %s5206_s20 = inlined_call_operand.hbm [shape: f32[2,128], index: 20, kind: output, shape index: {}]  }
   0x1   :  { %5229 = sst [smem:[#allocation39_spill]] %s5186_s0 }
   0x2   :  { %5230 = sst [smem:[#allocation40_spill]] %s5187_s1 }
   0x3   :  { %5231 = sst [smem:[#allocation41_spill]] %s5188_s2 }
   0x4   :  { %5232 = sst [smem:[#allocation42_spill]] %s5189_s3 }
   0x5   :  { %5233 = sst [smem:[#allocation43_spill]] %s5190_s4 }
   0x6   :  { %5234 = sst [smem:[#allocation44_spill]] %s5191_s5 }
   0x7   :  { %5235 = sst [smem:[#allocation45_spill]] %s5192_s6 }
   0x8   :  { %5236 = sst [smem:[#allocation46_spill]] %s5196_s10 }
   0x9   :  { %5237 = sst [smem:[#allocation47_spill]] %s5198_s12 }
   0xa   :  { %5238 = sst [smem:[#allocation48_spill]] %s5204_s18 }
   0xb   :  { %5239 = sst [smem:[#allocation49_spill]] %s5206_s20 }
   0xc   :  { %25 = vsyncpa [#allocation5], 0 }
   0xd   :  { %26 = vsyncpa [#allocation8], 0 }
   0xe   :  { %27 = vsyncpa [#allocation11], 0 }
   0xf   :  { %28 = vsyncpa [#allocation23], 0 }
  0x10   :  { %29 = vsyncpa [#allocation6], 0  ;;  %s4555_s1 = smov 0   ;;  %s4557_s22 = smov 0  }
  0x11   :  { %s4559_s23 = smov 0   ;;  %s4561_s24 = smov 0  }
  0x12 LB: > { %5240 = sst [smem:[#allocation33_spill]] %s4404_s22  ;;  %s4414_s2 = smov [#allocation4]   ;;  %s4412_s24 = sphi %s4561_s24, %s5300_s24   ;;  %s4408_s23 = sphi %s4559_s23, %s5303_s23   ;;  %s4404_s22 = sphi %s4557_s22, %s5302_s22   ;;  %s4400_s1 = sphi %s4555_s1, %s5301_s1  }
  0x13   : > { %5241 = sst [smem:[#allocation34_spill]] %s4408_s23  ;;  %s553_s25 = sshll.u32 %s4414_s2, 4  ;;  %s554_s25 = int_to_ptr.vmem [resolvable:$true] %s553_s25 }
  0x14   : > { %s4576_s3 = sadd.s32 4294967295, %s4412_s24   ;;  %p3383_p0 = scmp.ge.s32.totalorder %s4412_s24, 1 }
  0x15   : > { %p5217_p1 = scmp.eq.s32.totalorder %s4576_s3, 0  ;;  %p541_p2 = scmp.lt.s32.totalorder %s4412_s24, 3 }
  0x16   : > { %s4595_s28 = sadd.s32 1, %s4412_s24   ;;  %s3931_s29 = scalar_lea.vmem %s554_s25, 256 }
  0x17   : > { %p4582_p4 = pnand %p3383_p0, %p541_p2  ;;  %5245 = sst [smem:[#allocation36_spill]] %s4595_s28 }
  0x18   : > { %p3932_p8 = scmp.ne.s32.totalorder %s554_s25, %s3931_s29  ;;  %p3939_p11 = scmp.lt.s32.totalorder %s554_s25, %s554_s25 }
  0x19   : > { %s5242_s26 = scalar_select %p4582_p4, 1, 0 }
  0x1a   : > { %p3746_p5 = pneg %p4582_p4  ;;  %p3940_p12 = scmp.lt.s32.totalorder %s3931_s29, %s3931_s29 }
  0x1b   : > { %5243 = sst [smem:[#allocation35_spill]] %s5242_s26 }
  0x1c   : > { %p4590_p6 = pnand %p3746_p5, %p5217_p1  ;;  %p3941_p13 = por %p3940_p12, %p3939_p11 }
  0x1e   : > { %s5244_s27 = scalar_select %p4590_p6, 1, 0 }
  0x1f   : > { %p4599_p7 = pneg %p4590_p6 }
  0x21   : > { %s5246_s4 = scalar_select %p4599_p7, 1, 0 }
  0x22   : > { %p3934_p9 = pnand %p3932_p8, %p4599_p7 }
  0x24   : > { %p3935_p10 = pneg %p3934_p9 }
  0x26   : > { %p3942_p0 = pnand %p3941_p13, %p3935_p10 }
  0x28   : > { %3945 = shalt.err (!%p3942_p0)
}
  0x29   : > { %s5209_s30 = smov 128   ;;  %s5210_s0 = smov 8  }
  0x2a   : > { %s5247_s29 = sld [smem:[#allocation39_spill]]  ;;  %s149_s20 = ssub.s32 %s4412_s24, %s4595_s28 }
  0x2b   : > { %s152_s18 = sadd.s32 1, %s4408_s23  ;;  %p150_p2 = scmp.eq.s32.totalorder %s149_s20, 0 }
  0x2c   : > { %p159_p5 = scmp.ne.s32.totalorder %s4408_s23, %s4404_s22  ;;  %p160_p8 = scmp.eq.s32.totalorder %s4412_s24, 0 }
  0x2d   : > { %p165_p9 = scmp.ne.s32.totalorder %s4404_s22, %s4400_s1  ;;  %p3800_p12 = scmp.lt.s32.totalorder %s4412_s24, 2 }
  0x2e   : > { %s4622_s12 = scalar_select %p150_p2, %s4408_s23, %s152_s18  }
  0x2f   : > { %p161_p10 = por %p160_p8, %p159_p5  ;;  %p4626_p11 = por %p5217_p1, %p165_p9 }
  0x30   : > { %3749 = dma.hbm_to_vmem [thread:$0]  (!%p4590_p6), %s5247_s29, 256, %s554_s25, [#allocation5], %s5209_s30, %s5209_s30, %s5210_s0  }
  0x31   : > { %5248 = sst [smem:[#allocation37_spill]] %s4622_s12  ;;  %s646_s6 = sand.u32 1, %s4412_s24  }
  0x32   : > { %s5249_s10 = scalar_select %p4626_p11, 1, 0 }
  0x33   : > { %s4633_s26 = sand.u32 1, %s4408_s23   ;;  %s4636_s25 = sshll.u32 %s4412_s24, 4 }
  0x34   : > { %5250 = sst [smem:[#allocation38_spill]] %s5249_s10  ;;  %s649_s1 = scalar_lea.vmem [#allocation12], %s4633_s26 }
  0x35   : > { %s5251_s5 = sld [smem:[#allocation44_spill]]  ;;  %s656_s2 = sshll.u32 %s649_s1, 4  ;;  %s4645_s2 = int_to_ptr.vmem [resolvable:$true] %s656_s2 }
  0x36   : > { %p4647_p13 = pnand %p3800_p12, %p161_p10  ;;  %s4655_s0 = scalar_lea.hbm %s5193_s7, %s4636_s25 }
  0x37   : > { %s674_s20 = scalar_lea.vmem [#allocation13], %s4633_s26  ;;  %s4658_s12 = scalar_lea.sflag [#allocation5], %s646_s6 }
  0x38   : > { %s681_s21 = sshll.u32 %s674_s20, 4  ;;  %p4664_p2 = pneg %p4647_p13  ;;  %s682_s21 = int_to_ptr.vmem [resolvable:$true] %s681_s21 }
  0x3a   : > { %s5253_s1 = scalar_select %p4664_p2, 1, 0 }
  0x3b   : > { %s4642_s18 = scalar_lea.hbm %s5251_s5, %s4636_s25  ;;  %s3951_s24 = scalar_lea.hbm %s5251_s5, 32 }
  0x3c   : > { %s3946_s23 = scalar_lea.hbm %s4642_s18, 16  ;;  %p3952_p9 = scmp.lt.s32.totalorder %s4642_s18, %s5251_s5 }
  0x3d   : > { %p3947_p0 = scmp.ne.s32.totalorder %s4642_s18, %s3946_s23  ;;  %p3953_p10 = scmp.lt.s32.totalorder %s3951_s24, %s3946_s23 }
  0x3f   : > { %p3949_p5 = pnand %p4664_p2, %p3947_p0  ;;  %p3954_p12 = por %p3953_p10, %p3952_p9 }
  0x41   : > { %p3950_p8 = pneg %p3949_p5 }
  0x43   : > { %p3955_p3 = pnand %p3954_p12, %p3950_p8 }
  0x45   : > { %3958 = shalt.err (!%p3955_p3)
}
  0x46   : > { %s3959_s6 = scalar_lea.vmem %s4645_s2, 16  ;;  %s4417_s20 = smov [#allocation12]  }
  0x47   : > { %p3960_p1 = scmp.ne.s32.totalorder %s4645_s2, %s3959_s6  ;;  %s3964_s28 = sshll.u32 %s4417_s20, 4  ;;  %s3965_s28 = int_to_ptr.vmem [resolvable:$false] %s3964_s28 }
  0x48   : > { %s3966_s30 = scalar_lea.vmem %s3965_s28, 32  ;;  %p3967_p11 = scmp.lt.s32.totalorder %s4645_s2, %s3965_s28 }
  0x49   : > { %p3962_p0 = pnand %p3960_p1, %p4664_p2  ;;  %p3968_p4 = scmp.lt.s32.totalorder %s3966_s30, %s3959_s6 }
  0x4b   : > { %p3963_p5 = pneg %p3962_p0  ;;  %p3969_p6 = por %p3968_p4, %p3967_p11 }
  0x4d   : > { %p3970_p7 = pnand %p3969_p6, %p3963_p5 }
  0x4f   : > { %3973 = shalt.err (!%p3970_p7)
}
  0x50   : > { %3771 = dma.hbm_to_vmem [thread:$0]  (!%p4647_p13), %s4642_s18, 16, %s4645_s2, %s4658_s12  }
  0x51   : > { %s3974_s10 = scalar_lea.hbm %s4655_s0, 16  ;;  %s3979_s24 = scalar_lea.hbm %s5193_s7, 32 }
  0x52   : > { %p3975_p1 = scmp.ne.s32.totalorder %s4655_s0, %s3974_s10  ;;  %p3980_p4 = scmp.lt.s32.totalorder %s4655_s0, %s5193_s7 }
  0x53   : > { %p3981_p6 = scmp.lt.s32.totalorder %s3979_s24, %s3974_s10 }
  0x54   : > { %p3977_p3 = pnand %p3975_p1, %p4664_p2 }
  0x55   : > { %p3982_p7 = por %p3981_p6, %p3980_p4 }
  0x56   : > { %p3978_p8 = pneg %p3977_p3 }
  0x58   : > { %p3983_p11 = pnand %p3982_p7, %p3978_p8 }
  0x5a   : > { %3986 = shalt.err (!%p3983_p11)
}
  0x5b   : > { %s3987_s28 = scalar_lea.vmem %s682_s21, 16  ;;  %s4418_s18 = smov [#allocation13]  }
  0x5c   : > { %p3988_p9 = scmp.ne.s32.totalorder %s682_s21, %s3987_s28  ;;  %s3992_s2 = sshll.u32 %s4418_s18, 4  ;;  %s3993_s2 = int_to_ptr.vmem [resolvable:$false] %s3992_s2 }
  0x5d   : > { %s3994_s30 = scalar_lea.vmem %s3993_s2, 32  ;;  %p3995_p0 = scmp.lt.s32.totalorder %s682_s21, %s3993_s2 }
  0x5e   : > { %p3990_p10 = pnand %p3988_p9, %p4664_p2  ;;  %p3996_p5 = scmp.lt.s32.totalorder %s3994_s30, %s3987_s28 }
  0x60   : > { %p3991_p12 = pneg %p3990_p10  ;;  %p3997_p1 = por %p3996_p5, %p3995_p0 }
  0x62   : > { %p3998_p3 = pnand %p3997_p1, %p3991_p12 }
  0x64   : > { %4001 = shalt.err (!%p3998_p3)
}
  0x65   : > { %3774 = dma.hbm_to_vmem [thread:$0]  (!%p4647_p13), %s4655_s0, 16, %s682_s21, %s4658_s12  }
  0x66   : > { %s696_s23 = scalar_lea.hbm %s5194_s8, %s4636_s25  ;;  %s691_s24 = scalar_lea.vmem [#allocation14], %s4633_s26 }
  0x67   : > { %s698_s6 = sshll.u32 %s691_s24, 4  ;;  %s4002_s20 = scalar_lea.hbm %s696_s23, 16  ;;  %s699_s6 = int_to_ptr.vmem [resolvable:$true] %s698_s6 }
  0x68   : > { %p4003_p8 = scmp.ne.s32.totalorder %s696_s23, %s4002_s20  ;;  %s4007_s2 = scalar_lea.hbm %s5194_s8, 32 }
  0x69   : > { %p4008_p7 = scmp.lt.s32.totalorder %s696_s23, %s5194_s8  ;;  %p4009_p11 = scmp.lt.s32.totalorder %s4007_s2, %s4002_s20 }
  0x6a   : > { %p4005_p4 = pnand %p4003_p8, %p4664_p2 }
  0x6b   : > { %p4010_p9 = por %p4009_p11, %p4008_p7 }
  0x6c   : > { %p4006_p6 = pneg %p4005_p4 }
  0x6e   : > { %p4011_p10 = pnand %p4010_p9, %p4006_p6 }
  0x70   : > { %4014 = shalt.err (!%p4011_p10)
}
  0x71   : > { %s4015_s0 = scalar_lea.vmem %s699_s6, 16  ;;  %s4419_s21 = smov [#allocation14]  }
  0x72   : > { %p4016_p12 = scmp.ne.s32.totalorder %s699_s6, %s4015_s0  ;;  %s4020_s10 = sshll.u32 %s4419_s21, 4  ;;  %s4021_s10 = int_to_ptr.vmem [resolvable:$false] %s4020_s10 }
  0x73   : > { %s4022_s22 = scalar_lea.vmem %s4021_s10, 32  ;;  %p4023_p1 = scmp.lt.s32.totalorder %s699_s6, %s4021_s10 }
  0x74   : > { %p4018_p0 = pnand %p4016_p12, %p4664_p2  ;;  %p4024_p3 = scmp.lt.s32.totalorder %s4022_s22, %s4015_s0 }
  0x76   : > { %p4019_p5 = pneg %p4018_p0  ;;  %p4025_p8 = por %p4024_p3, %p4023_p1 }
  0x78   : > { %p4026_p4 = pnand %p4025_p8, %p4019_p5 }
  0x7a   : > { %4029 = shalt.err (!%p4026_p4)
}
  0x7b   : > { %3777 = dma.hbm_to_vmem [thread:$0]  (!%p4647_p13), %s696_s23, 16, %s699_s6, %s4658_s12  }
  0x7c   : > { %s713_s20 = scalar_lea.hbm %s5195_s9, %s4636_s25  ;;  %s708_s28 = scalar_lea.vmem [#allocation15], %s4633_s26 }
  0x7d   : > { %s715_s18 = sshll.u32 %s708_s28, 4  ;;  %s4030_s2 = scalar_lea.hbm %s713_s20, 16  ;;  %s716_s18 = int_to_ptr.vmem [resolvable:$true] %s715_s18 }
  0x7e   : > { %p4031_p6 = scmp.ne.s32.totalorder %s713_s20, %s4030_s2  ;;  %s4035_s21 = scalar_lea.hbm %s5195_s9, 32 }
  0x7f   : > { %p4036_p9 = scmp.lt.s32.totalorder %s713_s20, %s5195_s9  ;;  %p4037_p10 = scmp.lt.s32.totalorder %s4035_s21, %s4030_s2 }
  0x80   : > { %p4033_p7 = pnand %p4031_p6, %p4664_p2 }
  0x81   : > { %p4038_p12 = por %p4037_p10, %p4036_p9 }
  0x82   : > { %p4034_p11 = pneg %p4033_p7 }
  0x84   : > { %p4039_p0 = pnand %p4038_p12, %p4034_p11 }
  0x86   : > { %4042 = shalt.err (!%p4039_p0)
}
  0x87   : > { %s4043_s23 = scalar_lea.vmem %s716_s18, 16  ;;  %s4420_s6 = smov [#allocation15]  }
  0x88   : > { %p4044_p5 = scmp.ne.s32.totalorder %s716_s18, %s4043_s23  ;;  %s4048_s5 = sshll.u32 %s4420_s6, 4  ;;  %s4049_s5 = int_to_ptr.vmem [resolvable:$false] %s4048_s5 }
  0x89   : > { %s4050_s24 = scalar_lea.vmem %s4049_s5, 32  ;;  %p4051_p8 = scmp.lt.s32.totalorder %s716_s18, %s4049_s5 }
  0x8a   : > { %p4046_p1 = pnand %p4044_p5, %p4664_p2  ;;  %p4052_p4 = scmp.lt.s32.totalorder %s4050_s24, %s4043_s23 }
  0x8c   : > { %p4047_p3 = pneg %p4046_p1  ;;  %p4053_p6 = por %p4052_p4, %p4051_p8 }
  0x8e   : > { %p4054_p7 = pnand %p4053_p6, %p4047_p3 }
  0x90   : > { %4057 = shalt.err (!%p4054_p7)
}
  0x91   : > { %3780 = dma.hbm_to_vmem [thread:$0]  (!%p4647_p13), %s713_s20, 16, %s716_s18, %s4658_s12  }
  0x92   : > { %s738_s30 = scalar_lea.hbm %s5197_s11, %s4636_s25  ;;  %s733_s0 = scalar_lea.vmem [#allocation16], %s4633_s26 }
  0x93   : > { %s740_s21 = sshll.u32 %s733_s0, 4  ;;  %s4058_s10 = scalar_lea.hbm %s738_s30, 16  ;;  %s741_s21 = int_to_ptr.vmem [resolvable:$true] %s740_s21 }
  0x94   : > { %p4059_p11 = scmp.ne.s32.totalorder %s738_s30, %s4058_s10  ;;  %s4063_s6 = scalar_lea.hbm %s5197_s11, 32 }
  0x95   : > { %p4064_p12 = scmp.lt.s32.totalorder %s738_s30, %s5197_s11  ;;  %p4065_p0 = scmp.lt.s32.totalorder %s4063_s6, %s4058_s10 }
  0x96   : > { %p4061_p9 = pnand %p4059_p11, %p4664_p2 }
  0x97   : > { %p4066_p5 = por %p4065_p0, %p4064_p12 }
  0x98   : > { %p4062_p10 = pneg %p4061_p9 }
  0x9a   : > { %p4067_p1 = pnand %p4066_p5, %p4062_p10 }
  0x9c   : > { %4070 = shalt.err (!%p4067_p1)
}
  0x9d   : > { %s4071_s20 = scalar_lea.vmem %s741_s21, 16  ;;  %s4421_s18 = smov [#allocation16]  }
  0x9e   : > { %p4072_p3 = scmp.ne.s32.totalorder %s741_s21, %s4071_s20  ;;  %s4076_s28 = sshll.u32 %s4421_s18, 4  ;;  %s4077_s28 = int_to_ptr.vmem [resolvable:$false] %s4076_s28 }
  0x9f   : > { %s4078_s2 = scalar_lea.vmem %s4077_s28, 32  ;;  %p4079_p6 = scmp.lt.s32.totalorder %s741_s21, %s4077_s28 }
  0xa0   : > { %p4074_p8 = pnand %p4072_p3, %p4664_p2  ;;  %p4080_p7 = scmp.lt.s32.totalorder %s4078_s2, %s4071_s20 }
  0xa2   : > { %p4075_p4 = pneg %p4074_p8  ;;  %p4081_p11 = por %p4080_p7, %p4079_p6 }
  0xa4   : > { %p4082_p9 = pnand %p4081_p11, %p4075_p4 }
  0xa6   : > { %4085 = shalt.err (!%p4082_p9)
}
  0xa7   : > { %3783 = dma.hbm_to_vmem [thread:$0]  (!%p4647_p13), %s738_s30, 16, %s741_s21, %s4658_s12  }
  0xa8   : > { %s4422_s0 = smov [#allocation7]   ;;  %s4762_s6 = scalar_lea.hbm %s5199_s13, %s4636_s25 }
  0xa9   : > { %s567_s10 = sshll.u32 %s4422_s0, 4  ;;  %p5254_p12 = scmp.ne.s32.totalorder %s5246_s4, 0  ;;  %s568_s10 = int_to_ptr.vmem [resolvable:$true] %s567_s10 }
  0xaa   : > { %s4097_s5 = scalar_lea.vmem %s568_s10, 32  ;;  %p4105_p1 = scmp.lt.s32.totalorder %s568_s10, %s568_s10 }
  0xab   : > { %p4098_p10 = scmp.ne.s32.totalorder %s568_s10, %s4097_s5  ;;  %p4106_p3 = scmp.lt.s32.totalorder %s4097_s5, %s4097_s5 }
  0xad   : > { %p4100_p0 = pnand %p4098_p10, %p5254_p12  ;;  %p4107_p8 = por %p4106_p3, %p4105_p1 }
  0xaf   : > { %p4101_p5 = pneg %p4100_p0 }
  0xb1   : > { %p4108_p4 = pnand %p4107_p8, %p4101_p5 }
  0xb3   : > { %4111 = shalt.err (!%p4108_p4)
}
  0xb4   : > { %p5255_p6 = scmp.ne.s32.totalorder %s5244_s27, 0  ;;  %s5256_s24 = sld [smem:[#allocation40_spill]] }
  0xb5   : > { %s758_s20 = scalar_lea.vmem [#allocation17], %s4633_s26  ;;  %s4423_s28 = smov [#allocation9]  }
  0xb6   : > { %s765_s18 = sshll.u32 %s758_s20, 4  ;;  %s578_s2 = sshll.u32 %s4423_s28, 4  ;;  %s766_s18 = int_to_ptr.vmem [resolvable:$true] %s765_s18  ;;  %s579_s2 = int_to_ptr.vmem [resolvable:$true] %s578_s2 }
  0xb7   : > { %s4112_s0 = scalar_lea.hbm %s4762_s6, 16  ;;  %s4117_s5 = scalar_lea.hbm %s5199_s13, 32 }
  0xb8   : > { %p4113_p7 = scmp.ne.s32.totalorder %s4762_s6, %s4112_s0  ;;  %p4118_p10 = scmp.lt.s32.totalorder %s4762_s6, %s5199_s13 }
  0xb9   : > { %p4119_p0 = scmp.lt.s32.totalorder %s4117_s5, %s4112_s0 }
  0xba   : > { %3752 = dma.hbm_to_vmem [thread:$0]  (!%p5255_p6), %s5256_s24, 32, %s568_s10, [#allocation8]  }
  0xbb   : > { %p4115_p11 = pnand %p4113_p7, %p4664_p2  ;;  %p4120_p5 = por %p4119_p0, %p4118_p10 }
  0xbd   : > { %p4116_p9 = pneg %p4115_p11 }
  0xbf   : > { %p4121_p1 = pnand %p4120_p5, %p4116_p9 }
  0xc1   : > { %4124 = shalt.err (!%p4121_p1)
}
  0xc2   : > { %s4125_s10 = scalar_lea.vmem %s766_s18, 16  ;;  %s4424_s24 = smov [#allocation17]  }
  0xc3   : > { %p4126_p3 = scmp.ne.s32.totalorder %s766_s18, %s4125_s10  ;;  %s4130_s20 = sshll.u32 %s4424_s24, 4  ;;  %s4131_s20 = int_to_ptr.vmem [resolvable:$false] %s4130_s20 }
  0xc4   : > { %s4132_s28 = scalar_lea.vmem %s4131_s20, 32  ;;  %p4133_p7 = scmp.lt.s32.totalorder %s766_s18, %s4131_s20 }
  0xc5   : > { %p4128_p8 = pnand %p4126_p3, %p4664_p2  ;;  %p4134_p11 = scmp.lt.s32.totalorder %s4132_s28, %s4125_s10 }
  0xc7   : > { %p4129_p4 = pneg %p4128_p8  ;;  %p4135_p6 = por %p4134_p11, %p4133_p7 }
  0xc9   : > { %p4136_p12 = pnand %p4135_p6, %p4129_p4 }
  0xcb   : > { %4139 = shalt.err (!%p4136_p12)
}
  0xcc   : > { %3786 = dma.hbm_to_vmem [thread:$0]  (!%p4647_p13), %s4762_s6, 16, %s766_s18, %s4658_s12  }
  0xcd   : > { %s4151_s0 = scalar_lea.vmem %s579_s2, 16  ;;  %p5257_p10 = scmp.ne.s32.totalorder %s5246_s4, 0 }
  0xce   : > { %p4152_p9 = scmp.ne.s32.totalorder %s579_s2, %s4151_s0  ;;  %s4158_s22 = scalar_lea.vmem %s579_s2, 32 }
  0xcf   : > { %p4159_p1 = scmp.lt.s32.totalorder %s579_s2, %s579_s2  ;;  %p4160_p3 = scmp.lt.s32.totalorder %s4158_s22, %s4151_s0 }
  0xd0   : > { %p4154_p0 = pnand %p4152_p9, %p5257_p10 }
  0xd1   : > { %p4161_p8 = por %p4160_p3, %p4159_p1 }
  0xd2   : > { %p4155_p5 = pneg %p4154_p0 }
  0xd4   : > { %p4162_p2 = pnand %p4161_p8, %p4155_p5 }
  0xd6   : > { %4165 = shalt.err (!%p4162_p2)
}
  0xd7   : > { %p5258_p12 = scmp.ne.s32.totalorder %s5244_s27, 0  ;;  %s5259_s30 = sld [smem:[#allocation41_spill]] }
  0xd8   : > { %s4425_s6 = smov [#allocation10]   ;;  %s4800_s24 = scalar_lea.hbm %s5200_s14, %s4636_s25 }
  0xd9   : > { %s589_s18 = sshll.u32 %s4425_s6, 4  ;;  %s590_s18 = int_to_ptr.vmem [resolvable:$true] %s589_s18 }
  0xda   : > { %s4177_s20 = scalar_lea.vmem %s590_s18, 16  ;;  %s4184_s28 = scalar_lea.vmem %s590_s18, 32 }
  0xdb   : > { %p4178_p6 = scmp.ne.s32.totalorder %s590_s18, %s4177_s20  ;;  %p4185_p7 = scmp.lt.s32.totalorder %s590_s18, %s590_s18 }
  0xdc   : > { %p4186_p11 = scmp.lt.s32.totalorder %s4184_s28, %s4177_s20 }
  0xdd   : > { %3755 = dma.hbm_to_vmem [thread:$0]  (!%p5258_p12), %s5259_s30, 16, %s579_s2, [#allocation8]  }
  0xde   : > { %p4180_p2 = pnand %p4178_p6, %p5257_p10  ;;  %p4187_p9 = por %p4186_p11, %p4185_p7 }
  0xe0   : > { %p4181_p4 = pneg %p4180_p2 }
  0xe2   : > { %p4188_p0 = pnand %p4187_p9, %p4181_p4 }
  0xe4   : > { %4191 = shalt.err (!%p4188_p0)
}
  0xe5   : > { %s5260_s22 = sld [smem:[#allocation42_spill]]  ;;  %s775_s23 = scalar_lea.vmem [#allocation18], %s4633_s26 }
  0xe6   : > { %s782_s5 = sshll.u32 %s775_s23, 4  ;;  %s4426_s30 = smov [#allocation20]   ;;  %s783_s5 = int_to_ptr.vmem [resolvable:$true] %s782_s5 }
  0xe7   : > { %s599_s6 = sshll.u32 %s4426_s30, 4  ;;  %s4192_s21 = scalar_lea.hbm %s4800_s24, 16  ;;  %s600_s6 = int_to_ptr.vmem [resolvable:$true] %s599_s6 }
  0xe8   : > { %p4193_p5 = scmp.ne.s32.totalorder %s4800_s24, %s4192_s21  ;;  %p5261_p1 = scmp.ne.s32.totalorder %s5253_s1, 0 }
  0xe9   : > { %s4197_s28 = scalar_lea.hbm %s5200_s14, 32  ;;  %p4198_p6 = scmp.lt.s32.totalorder %s4800_s24, %s5200_s14 }
  0xea   : > { %p4195_p3 = pnand %p4193_p5, %p5261_p1  ;;  %p4199_p2 = scmp.lt.s32.totalorder %s4197_s28, %s4192_s21 }
  0xeb   : > { %3758 = dma.hbm_to_vmem [thread:$0]  (!%p5258_p12), %s5260_s22, 16, %s590_s18, [#allocation11]  }
  0xec   : > { %p4196_p8 = pneg %p4195_p3  ;;  %p4200_p4 = por %p4199_p2, %p4198_p6 }
  0xee   : > { %p4201_p7 = pnand %p4200_p4, %p4196_p8 }
  0xf0   : > { %4204 = shalt.err (!%p4201_p7)
}
  0xf1   : > { %s4205_s18 = scalar_lea.vmem %s783_s5, 16  ;;  %s4427_s22 = smov [#allocation18]  }
  0xf2   : > { %p4206_p11 = scmp.ne.s32.totalorder %s783_s5, %s4205_s18  ;;  %s4210_s23 = sshll.u32 %s4427_s22, 4  ;;  %s4211_s23 = int_to_ptr.vmem [resolvable:$false] %s4210_s23 }
  0xf3   : > { %s4212_s30 = scalar_lea.vmem %s4211_s23, 32  ;;  %p4213_p5 = scmp.lt.s32.totalorder %s783_s5, %s4211_s23 }
  0xf4   : > { %p4208_p9 = pnand %p4206_p11, %p5261_p1  ;;  %p4214_p3 = scmp.lt.s32.totalorder %s4212_s30, %s4205_s18 }
  0xf6   : > { %p4209_p0 = pneg %p4208_p9  ;;  %p4215_p12 = por %p4214_p3, %p4213_p5 }
  0xf8   : > { %p4216_p10 = pnand %p4215_p12, %p4209_p0 }
  0xfa   : > { %4219 = shalt.err (!%p4216_p10)
}
  0xfb   : > { %3789 = dma.hbm_to_vmem [thread:$0]  (!%p4647_p13), %s4800_s24, 16, %s783_s5, %s4658_s12  }
  0xfc   : > { %s4231_s21 = scalar_lea.vmem %s600_s6, 512  ;;  %p5262_p6 = scmp.ne.s32.totalorder %s5246_s4, 0 }
  0xfd   : > { %p4232_p8 = scmp.ne.s32.totalorder %s600_s6, %s4231_s21  ;;  %p4239_p7 = scmp.lt.s32.totalorder %s600_s6, %s600_s6 }
  0xfe   : > { %p4240_p11 = scmp.lt.s32.totalorder %s4231_s21, %s4231_s21 }
  0xff   : > { %p4234_p2 = pnand %p4232_p8, %p5262_p6 }
 0x100   : > { %p4241_p9 = por %p4240_p11, %p4239_p7 }
 0x101   : > { %p4235_p4 = pneg %p4234_p2 }
 0x103   : > { %p4242_p1 = pnand %p4241_p9, %p4235_p4 }
 0x105   : > { %4245 = shalt.err (!%p4242_p1)
}
 0x106   : > { %p5263_p12 = scmp.ne.s32.totalorder %s5244_s27, 0  ;;  %s5264_s10 = smov 8  }
 0x107   : > { %s5265_s20 = smov 128   ;;  %s4428_s24 = smov [#allocation21]  }
 0x108   : > { %3761 = dma.hbm_to_vmem [thread:$0]  (!%p5263_p12), %s5202_s16, 512, %s600_s6, [#allocation8], %s5265_s20, %s5265_s20, %s5264_s10  }
 0x109   : > { %s613_s5 = sshll.u32 %s4428_s24, 4  ;;  %s4429_s0 = smov [#allocation22]   ;;  %s614_s5 = int_to_ptr.vmem [resolvable:$true] %s613_s5 }
 0x10a   : > { %s627_s18 = sshll.u32 %s4429_s0, 4  ;;  %s4257_s22 = scalar_lea.vmem %s614_s5, 16  ;;  %s628_s18 = int_to_ptr.vmem [resolvable:$true] %s627_s18 }
 0x10b   : > { %p4258_p10 = scmp.ne.s32.totalorder %s614_s5, %s4257_s22  ;;  %s4264_s23 = scalar_lea.vmem %s614_s5, 32 }
 0x10c   : > { %p4265_p5 = scmp.lt.s32.totalorder %s614_s5, %s614_s5  ;;  %p4266_p3 = scmp.lt.s32.totalorder %s4264_s23, %s4257_s22 }
 0x10d   : > { %p4260_p0 = pnand %p4258_p10, %p5262_p6 }
 0x10e   : > { %p4267_p8 = por %p4266_p3, %p4265_p5 }
 0x10f   : > { %p4261_p1 = pneg %p4260_p0 }
 0x111   : > { %p4268_p2 = pnand %p4267_p8, %p4261_p1 }
 0x113   : > { %4271 = shalt.err (!%p4268_p2)
}
 0x114   : > { %3764 = dma.hbm_to_vmem [thread:$0]  (!%p5263_p12), %s5203_s17, 16, %s614_s5, [#allocation11]  }
 0x115   : > { %s4283_s21 = scalar_lea.vmem %s628_s18, 16  ;;  %s4290_s10 = scalar_lea.vmem %s628_s18, 32 }
 0x116   : > { %p4284_p4 = scmp.ne.s32.totalorder %s628_s18, %s4283_s21  ;;  %p4291_p9 = scmp.lt.s32.totalorder %s628_s18, %s628_s18 }
 0x117   : > { %p4292_p10 = scmp.lt.s32.totalorder %s4290_s10, %s4283_s21 }
 0x118   : > { %p4286_p7 = pnand %p4284_p4, %p5262_p6 }
 0x119   : > { %p4293_p0 = por %p4292_p10, %p4291_p9 }
 0x11a   : > { %p4287_p11 = pneg %p4286_p7 }
 0x11c   : > { %p4294_p5 = pnand %p4293_p0, %p4287_p11 }
 0x11e   : > { %4297 = shalt.err (!%p4294_p5)
}
 0x11f   : > { %3767 = dma.hbm_to_vmem [thread:$0]  (!%p5263_p12), %s5205_s19, 16, %s628_s18, [#allocation23]  }
 0x120   : > { %s797_s4 = scalar_lea.hbm %s5201_s15, %s4636_s25  ;;  %s792_s5 = scalar_lea.vmem [#allocation19], %s4633_s26 }
 0x121   : > { %s799_s0 = sshll.u32 %s792_s5, 4  ;;  %s4298_s22 = scalar_lea.hbm %s797_s4, 16  ;;  %s800_s0 = int_to_ptr.vmem [resolvable:$true] %s799_s0 }
 0x122   : > { %p4299_p6 = scmp.ne.s32.totalorder %s797_s4, %s4298_s22  ;;  %p5266_p1 = scmp.ne.s32.totalorder %s5253_s1, 0 }
 0x123   : > { %s4303_s30 = scalar_lea.hbm %s5201_s15, 32  ;;  %p4304_p12 = scmp.lt.s32.totalorder %s797_s4, %s5201_s15 }
 0x124   : > { %p4301_p3 = pnand %p4299_p6, %p5266_p1  ;;  %p4305_p2 = scmp.lt.s32.totalorder %s4303_s30, %s4298_s22 }
 0x126   : > { %p4302_p8 = pneg %p4301_p3  ;;  %p4306_p4 = por %p4305_p2, %p4304_p12 }
 0x128   : > { %p4307_p7 = pnand %p4306_p4, %p4302_p8 }
 0x12a   : > { %4310 = shalt.err (!%p4307_p7)
}
 0x12b   : > { %s4311_s26 = scalar_lea.vmem %s800_s0, 16  ;;  %s4430_s25 = smov [#allocation19]  }
 0x12c   : > { %p4312_p11 = scmp.ne.s32.totalorder %s800_s0, %s4311_s26  ;;  %s4316_s18 = sshll.u32 %s4430_s25, 4  ;;  %s4317_s18 = int_to_ptr.vmem [resolvable:$false] %s4316_s18 }
 0x12d   : > { %s4318_s10 = scalar_lea.vmem %s4317_s18, 32  ;;  %p4319_p0 = scmp.lt.s32.totalorder %s800_s0, %s4317_s18 }
 0x12e   : > { %p4314_p9 = pnand %p4312_p11, %p5266_p1  ;;  %p4320_p5 = scmp.lt.s32.totalorder %s4318_s10, %s4311_s26 }
 0x130   : > { %p4315_p10 = pneg %p4314_p9  ;;  %p4321_p6 = por %p4320_p5, %p4319_p0 }
 0x132   : > { %p4322_p3 = pnand %p4321_p6, %p4315_p10 }
 0x134   : > { %4325 = shalt.err (!%p4322_p3)
}
 0x135   : > { %3792 = dma.hbm_to_vmem [thread:$0]  (!%p4647_p13), %s797_s4, 16, %s800_s0, %s4658_s12  }
 0x136   : > { %s5267_s20 = sld [smem:[#allocation35_spill]] }
 0x13c   : > { %p5268_p8 = scmp.ne.s32.totalorder %s5267_s20, 0 }
 0x13d   : > { %p5269_p12 = scmp.eq.s32.totalorder (!%p5268_p8), %s4576_s3, 0 }
 0x13e   : > { %808 = sbr.rel (%p5268_p8) target bundleno = 3568 (0xdf0), region = 100 }
 0x143   : > { %4367 = dma.done.wait (%p5269_p12), [#allocation5], 256   ;;  %p5270_p1 = pmov %p5269_p12 }
 0x145   : > { %4369 = vsyncadd (%p5270_p1), [#allocation5], 4294967040  ;;  %p5271_p2 = pmov %p5270_p1 }
 0x146   : > { %p5272_p4 = pmov %p5270_p1 }
 0x147   : > { %4371 = dma.done.wait (%p5271_p2), [#allocation8], 48  }
 0x148   : > { %4373 = vsyncadd (%p5272_p4), [#allocation8], 4294967248  ;;  %p5273_p7 = pmov %p5270_p1 }
 0x149   : > { %p5274_p13 = pmov %p5270_p1 }
 0x14a   : > { %4375 = dma.done.wait (%p5273_p7), [#allocation11], 16  }
 0x14b   : > { %4377 = vsyncadd (%p5274_p13), [#allocation11], 4294967280  ;;  %s5275_s12 = sld [smem:[#allocation33_spill]]  ;;  %s826_s1 = sand.u32 1, %s4576_s3  }
 0x14c   : > { %s5276_s29 = sld [smem:[#allocation38_spill]]  ;;  %s827_s2 = scalar_lea.sflag [#allocation5], %s826_s1 }
 0x151   : > { %s4885_s28 = sand.u32 1, %s5275_s12  }
 0x152   : > { %p5277_p11 = scmp.ne.s32.totalorder %s5276_s29, 0 }
 0x154   : > { %4379 = dma.done.wait (%p5277_p11), %s827_s2, 128  }
 0x155   : > { %4381 = vsyncadd (%p5277_p11), %s827_s2, 4294967168  ;;  %p5278_p9 = pmov %p5270_p1 }
 0x156   : > { %p5279_p10 = pmov %p5270_p1 }
 0x157   : > { %4383 = dma.done.wait (%p5278_p9), [#allocation8], 512  }
 0x158   : > { %4385 = vsyncadd (%p5279_p10), [#allocation8], 4294966784  ;;  %p5280_p0 = pmov %p5270_p1 }
 0x15a   : > { %4387 = dma.done.wait (%p5280_p0), [#allocation11], 16   ;;  %p5281_p5 = pmov %p5280_p0 }
 0x15b   : > { %p5282_p6 = pmov %p5280_p0 }
 0x15c   : > { %4389 = vsyncadd (%p5281_p5), [#allocation11], 4294967280 }
 0x15d   : > { %4391 = dma.done.wait (%p5282_p6), [#allocation23], 16   ;;  %p5283_p3 = pmov %p5280_p0 }
 0x15e   : > { %p996_p8 = scmp.lt.s32.totalorder %s4576_s3, 1  ;;  %s5284_s10 = sld [smem:[#allocation43_spill]] }
 0x15f   : > { %4393 = vsyncadd (%p5283_p3), [#allocation23], 4294967280  ;;  %s5285_s1 = sld [smem:[#allocation45_spill]]  ;;  %p5288_p12 = scmp.ne.s32.totalorder %s4576_s3, 0 }
 0x160   : > { %s997_s6 = scalar_select %p996_p8, %s4576_s3, 1 }
 0x161   : > { %s5286_s27 = sld [smem:[#allocation46_spill]] }
 0x162   : > { %s3470_s21 = sshll.u32 %s997_s6, 5  ;;  %s3473_s26 = sshll.u32 %s997_s6, 6 }
 0x163   : > { %s5287_s4 = sld [smem:[#allocation47_spill]] }
 0x164   : > { %s4916_s20 = scalar_lea.vmem %s5284_s10, %s3470_s21 }
 0x165   : > { %s4921_s2 = scalar_lea.vmem %s5285_s1, %s3470_s21  ;;  %1019 = sbr.rel (%p5288_p12) target bundleno = 676 (0x2a4), region = 164 }
 0x167   : > { %s4926_s22 = scalar_lea.vmem %s5286_s27, %s3470_s21 }
 0x169   : > { %s4931_s24 = scalar_lea.vmem %s5287_s4, %s3473_s26 }
 0x16a   : > { %v1020_v0 = vld [vmem:[#allocation4] sm:$0xff]  ;;  %vm1024_vm0 = vcmask 261120   ;;  %v1021_v1 = vld [vmem:[#allocation4 + $0x8] sm:$0xff]  ;;  %v3417_v21 = vld [vmem:[#allocation9] ss:$0 sm:$0xff] }
 0x16b   : > { %v1025_v2 = vsel %vm1024_vm0, %v1020_v0, 0.0  ;;  %v1028_v3 = vsel %vm1024_vm0, %v1021_v1, 0.0  ;;  %v3418_v23 = vld [vmem:[#allocation10] ss:$0 sm:$0xff] }
 0x16c   : > { %1026 = vadd.xlane.f32.xlu0 %v1025_v2 }
 0x170   : > { %1029 = vadd.xlane.f32.xlu0 %v1028_v3 }
 0x1f5   : > { %v1027_v4 = vpop.xlane.xlu0 %1026 }
 0x1f6   : > { %v1032_v5 = vmul.f32 0.03125, %v1027_v4 }
 0x1f8   : > { %v1034_v6 = vsub.f32 %v1020_v0, %v1032_v5 }
 0x1f9   : > { %v1030_v7 = vpop.xlane.xlu0 %1029 }
 0x1fa   : > { %v1033_v8 = vmul.f32 0.03125, %v1030_v7  ;;  %v1036_v9 = vmul.f32 %v1034_v6, %v1034_v6 }
 0x1fc   : > { %v1035_v10 = vsub.f32 %v1021_v1, %v1033_v8  ;;  %v1038_v11 = vsel %vm1024_vm0, %v1036_v9, 0.0 }
 0x1fd   : > { %1039 = vadd.xlane.f32.xlu1 %v1038_v11 }
 0x1fe   : > { %v1037_v12 = vmul.f32 %v1035_v10, %v1035_v10 }
 0x200   : > { %v1041_v13 = vsel %vm1024_vm0, %v1037_v12, 0.0 }
 0x201   : > { %1042 = vadd.xlane.f32.xlu1 %v1041_v13 }
 0x286   : > { %v1040_v14 = vpop.xlane.xlu1 %1039 }
 0x287   : > { %v1044_v15 = vmul.f32 0.03125, %v1040_v14 }
 0x289   : > { %v1046_v16 = vadd.f32 1e-12, %v1044_v15 }
 0x28a   : > { %v1043_v17 = vpop.xlane.xlu1 %1042 }
 0x28b   : > { %3870 = vrsqrt.f32 %v1046_v16  ;;  %v1045_v18 = vmul.f32 0.03125, %v1043_v17 }
 0x28d   : > { %v1047_v19 = vadd.f32 1e-12, %v1045_v18 }
 0x28f   : > { %3872 = vrsqrt.f32 %v1047_v19 }
 0x298   : > { %v3871_v20 = vpop.eup %3870 }
 0x299   : > { %v1050_v22 = vmul.f32 %v3871_v20, %v1034_v6 }
 0x29b   : > { %v1058_v24 = vmul.f32 %v3417_v21, %v1050_v22 }
 0x29c   : > { %v3873_v25 = vpop.eup %3872 }
 0x29d   : > { %v1066_v26 = vadd.f32 %v3418_v23, %v1058_v24  ;;  %v1051_v27 = vmul.f32 %v3873_v25, %v1035_v10 }
 0x29f   : > { %1068 = vst.msk [vmem:[#allocation2] sm:$0xff] %vm1024_vm0, %v1066_v26  ;;  %v1059_v28 = vmul.f32 %v3417_v21, %v1051_v27 }
 0x2a1   : > { %v1067_v29 = vadd.f32 %v3418_v23, %v1059_v28 }
 0x2a3   : > { %1069 = vst.msk [vmem:[#allocation2 + $0x8] sm:$0xff] %vm1024_vm0, %v1067_v29 }
 0x2a4 PF: > { %v1075_v30 = vld [vmem:[%s4916_s20 + $0x18] sm:$0xff]  ;;  %v1074_v31 = vld [vmem:[%s4916_s20 + $0x10] sm:$0xff]  ;;  %vm1083_vm1 = vcmask 261120   ;;  %v1073_v33 = vld [vmem:[%s4916_s20 + $0x8] sm:$0xff]  ;;  %v4431_v36 = vmov 0.0   ;;  %vm4432_vm2 = vmmov 0  }
 0x2a5   : > { %3544 = vmatprep.subr.mxu1 %v1075_v30  ;;  %v1072_v34 = vld [vmem:[%s4916_s20] sm:$0xff]  ;;  %3565 = vmatprep.subr.mxu0 %v4431_v36  ;;  %s5289_s4 = scalar_lea.vmem [#allocation12], %s4885_s28  ;;  %s4433_s5 = smov 120   ;;  %vm1173_vm3 = vcmask 64512   ;;  %v3422_v57 = vld [vmem:[#allocation7] ss:$0 sm:$0xff] }
 0x2a6   : > { %v4943_v32 = vld [vmem:[#allocation2] sm:$0xff]  ;;  %3545 = vmatpush3.msra.mxu1 %v1075_v30  ;;  %3567 = vmatprep.mubr.msk.f32.mxu0 %vm4432_vm2, %v4431_v36  ;;  %s4434_s0 = smov 96   ;;  %s4435_s27 = smov 80   ;;  %v3435_v9 = vld [vmem:[#allocation7 + $0x1] ss:$0 sm:$0xff]  ;;  %vm1505_vm4 = vcmask 130112  }
 0x2a7   : > { %3552 = vmatprep.mubr.msk.f32.mxu1 %vm1083_vm1, %v4943_v32  ;;  %3546 = vmatprep.subr.mxu1 %v1074_v31  ;;  %v3419_v38 = vld [vmem:[%s5289_s4] ss:$0 sm:$0xff]  ;;  %s4436_s23 = smov 88   ;;  %s4437_s30 = smov 72   ;;  %vm1676_vm5 = vcmask 195712   ;;  %vm1847_vm6 = vcmask 261312  }
 0x2a8   : > { %3547 = vmatpush3.msra.mxu1 %v1074_v31  ;;  %s4438_s6 = smov 112   ;;  %s4439_s21 = smov 104   ;;  %vm2787_vm7 = vcmask 523264  }
 0x2a9   : > { %3548 = vmatprep.subr.mxu1 %v1073_v33  ;;  %s4440_s26 = smov 56   ;;  %s4441_s25 = smov 64  }
 0x2aa   : > { %3549 = vmatpush3.msra.mxu1 %v1073_v33  ;;  %v4949_v35 = vld [vmem:[#allocation2 + $0x8] sm:$0xff]  ;;  %s4442_s18 = smov 40   ;;  %s4443_s10 = smov 48  }
 0x2ab   : > { %3550 = vmatprep.subr.mxu1 %v1072_v34  ;;  %s4444_s20 = smov 8   ;;  %s4445_s12 = smov 16  }
 0x2ac   : > { %3551 = vmatpush3.msra.mxu1 %v1072_v34  ;;  %s4446_s29 = smov 24   ;;  %s5290_s1 = scalar_lea.vmem [#allocation13], %s4885_s28 }
 0x2ad   : > { %3553 = vmatmul.mubr.msk.f32.vlgmr.msra.gmra.mxu1 %vm1083_vm1, %v4949_v35  ;;  %3555 = vmatprep.subr.mxu1 %v4431_v36  ;;  %s5292_s4 = scalar_lea.vmem [#allocation15], %s4885_s28  ;;  %p3461_p1 = scmp.ne.s32.totalorder %s4576_s3, 1 }
 0x2ae   : > { %3557 = vmatprep.mubr.msk.f32.mxu1 %vm4432_vm2, %v4431_v36 }
 0x36d   : > { %v3554_v37 = vpop.f32.mrf.mxu1 }
 0x36e   : > { %v4969_v41 = vadd.f32 %v3554_v37, %v3419_v38 }
 0x36f   : > { %v1156_v39 = vpop.f32.mrf.mxu1 }
 0x370   : > { %v4961_v40 = vadd.f32 %v3419_v38, %v1156_v39 }
 0x372   : > { %1336 = vrot.lane.b32.xlu1 %v4961_v40, %s4433_s5  ;;  %1171 = vrot.lane.b32.xlu0 %v4961_v40, %s4434_s0 }
 0x376   : > { %1509 = vrot.lane.b32.xlu1 %v4961_v40, %s4435_s27  ;;  %1338 = vrot.lane.b32.xlu0 %v4961_v40, %s4436_s23 }
 0x37a   : > { %1680 = vrot.lane.b32.xlu1 %v4961_v40, %s4437_s30  ;;  %1507 = vrot.lane.b32.xlu0 %v4961_v40, %s4438_s6 }
 0x37e   : > { %1855 = vrot.lane.b32.xlu1 %v4969_v41, %s4434_s0  ;;  %1678 = vrot.lane.b32.xlu0 %v4961_v40, %s4439_s21  ;;  %s5296_s0 = scalar_lea.vmem [#allocation19], %s4885_s28 }
 0x382   : > { %2019 = vrot.lane.b32.xlu1 %v4969_v41, %s4433_s5  ;;  %2021 = vrot.lane.b32.xlu0 %v4969_v41, %s4436_s23  ;;  %s5295_s5 = scalar_lea.vmem [#allocation18], %s4885_s28  ;;  %s5297_s23 = sld [smem:[#allocation48_spill]] (!%p3461_p1) }
 0x386   : > { %2189 = vrot.lane.b32.xlu1 %v4969_v41, %s4438_s6  ;;  %2191 = vrot.lane.b32.xlu0 %v4969_v41, %s4435_s27 }
 0x38a   : > { %2359 = vrot.lane.b32.xlu1 %v4969_v41, %s4439_s21  ;;  %2361 = vrot.lane.b32.xlu0 %v4969_v41, %s4437_s30  ;;  %s5298_s30 = smov (!%p3461_p1), %s5297_s23 }
 0x38e   : > { %1425 = vrot.lane.b32.xlu1 %v4961_v40, %s4440_s26  ;;  %1259 = vrot.lane.b32.xlu0 %v4961_v40, %s4441_s25 }
 0x3e4   : > { %v1337_v42 = vpop.permute.xlu1 %1336  ;;  %v1172_v43 = vpop.permute.xlu0 %1171 }
 0x3e5   : > { %3556 = vmatpush3.xpose.msk.msra.mxu1 %vm1173_vm3, %v1172_v43 }
 0x3e6   : > { %3560 = vmatprep.subr.mxu1 %v4431_v36 }
 0x3e8   : > { %v1510_v44 = vpop.permute.xlu1 %1509  ;;  %3558 = vmatmul.mubr.msk.f32.vlgmr.msra.gmra.mxu1 %vm1173_vm3, %v4961_v40  ;;  %v1339_v45 = vpop.permute.xlu0 %1338 }
 0x3e9   : > { %3566 = vmatpush3.xpose.msk.msra.mxu0 %vm1173_vm3, %v1339_v45  ;;  %3562 = vmatprep.mubr.msk.f32.mxu1 %vm4432_vm2, %v4431_v36 }
 0x3ea   : > { %3575 = vmatprep.subr.mxu0 %v4431_v36 }
 0x3ec   : > { %v1681_v46 = vpop.permute.xlu1 %1680  ;;  %3568 = vmatmul.mubr.msk.f32.vlgmr.msra.gmra.mxu0 %vm1173_vm3, %v1337_v42  ;;  %v1508_v47 = vpop.permute.xlu0 %1507 }
 0x3ed   : > { %3576 = vmatpush3.xpose.msk.msra.mxu0 %vm1173_vm3, %v1510_v44  ;;  %3577 = vmatprep.mubr.msk.f32.mxu0 %vm4432_vm2, %v4431_v36 }
 0x3ee   : > { %3585 = vmatprep.subr.mxu0 %v4431_v36 }
 0x3f0   : > { %3578 = vmatmul.mubr.msk.f32.vlgmr.msra.gmra.mxu0 %vm1173_vm3, %v1508_v47  ;;  %v1679_v48 = vpop.permute.xlu0 %1678  ;;  %v1856_v49 = vpop.permute.xlu1 %1855 }
 0x3f1   : > { %3586 = vmatpush3.xpose.msk.msra.mxu0 %vm1173_vm3, %v1681_v46  ;;  %3587 = vmatprep.mubr.msk.f32.mxu0 %vm4432_vm2, %v4431_v36 }
 0x3f2   : > { %3595 = vmatprep.subr.mxu0 %v4431_v36 }
 0x3f4   : > { %3588 = vmatmul.mubr.msk.f32.vlgmr.msra.gmra.mxu0 %vm1173_vm3, %v1679_v48  ;;  %v2022_v50 = vpop.permute.xlu0 %2021  ;;  %v2020_v51 = vpop.permute.xlu1 %2019 }
 0x3f5   : > { %3596 = vmatpush3.xpose.msk.msra.mxu0 %vm1173_vm3, %v1856_v49  ;;  %3597 = vmatprep.mubr.msk.f32.mxu0 %vm4432_vm2, %v4431_v36 }
 0x3f6   : > { %3605 = vmatprep.subr.mxu0 %v4431_v36 }
 0x3f8   : > { %3598 = vmatmul.mubr.msk.f32.vlgmr.msra.gmra.mxu0 %vm1173_vm3, %v4969_v41  ;;  %v2192_v52 = vpop.permute.xlu0 %2191  ;;  %v2190_v54 = vpop.permute.xlu1 %2189 }
 0x3f9   : > { %3606 = vmatpush3.xpose.msk.msra.mxu0 %vm1173_vm3, %v2022_v50  ;;  %3607 = vmatprep.mubr.msk.f32.mxu0 %vm4432_vm2, %v4431_v36 }
 0x3fa   : > { %3615 = vmatprep.subr.mxu0 %v4431_v36 }
 0x3fc   : > { %3608 = vmatmul.mubr.msk.f32.vlgmr.msra.gmra.mxu0 %vm1173_vm3, %v2020_v51  ;;  %v2362_v53 = vpop.permute.xlu0 %2361  ;;  %v2360_v56 = vpop.permute.xlu1 %2359 }
 0x3fd   : > { %3616 = vmatpush3.xpose.msk.msra.mxu0 %vm1173_vm3, %v2192_v52  ;;  %3617 = vmatprep.mubr.msk.f32.mxu0 %vm4432_vm2, %v4431_v36 }
 0x3fe   : > { %3625 = vmatprep.subr.mxu0 %v4431_v36 }
 0x400   : > { %3618 = vmatmul.mubr.msk.f32.vlgmr.msra.gmra.mxu0 %vm1173_vm3, %v2190_v54  ;;  %v1260_v55 = vpop.permute.xlu0 %1259  ;;  %v5035_v27 = vpop.permute.xlu1 %1425 }
 0x401   : > { %3561 = vmatpush3.msra.mxu1 %v1260_v55  ;;  %3626 = vmatpush3.xpose.msk.msra.mxu0 %vm1173_vm3, %v2362_v53 }
 0x402   : > { %3627 = vmatprep.mubr.msk.f32.mxu0 %vm4432_vm2, %v4431_v36  ;;  %3570 = vmatprep.subr.mxu1 %v4431_v36 }
 0x404   : > { %3628 = vmatmul.mubr.msk.f32.vlgmr.msra.gmra.mxu0 %vm1173_vm3, %v2360_v56 }
 0x4a8   : > { %v1244_v58 = vpop.f32.mrf.mxu1 }
 0x4a9   : > { %v1245_v59 = vadd.f32 %v3422_v57, %v1244_v58 }
 0x4aa   : > { %v3559_v60 = vpop.f32.mrf.mxu1 }
 0x4ab   : > { %v1248_v61 = vsel %vm1173_vm3, %v1245_v59, -inf }
 0x4ac   : > { %1249 = vmax.xlane.f32.xlu0 %v1248_v61  ;;  %v1410_v62 = vpop.f32.mrf.mxu0 }
 0x4ad   : > { %v1411_v63 = vadd.f32 %v3422_v57, %v1410_v62 }
 0x4ae   : > { %v3569_v0 = vpop.f32.mrf.mxu0 }
 0x4af   : > { %v1414_v1 = vsel %vm1173_vm3, %v1411_v63, -inf }
 0x4b0   : > { %1415 = vmax.xlane.f32.xlu1 %v1414_v1  ;;  %v1581_v2 = vpop.f32.mrf.mxu0 }
 0x4b1   : > { %v1582_v3 = vadd.f32 %v3422_v57, %v1581_v2 }
 0x4b2   : > { %v3579_v4 = vpop.f32.mrf.mxu0 }
 0x4b3   : > { %v1585_v5 = vsel %vm1173_vm3, %v1582_v3, -inf }
 0x4b4   : > { %1586 = vmax.xlane.f32.xlu0 %v1585_v5  ;;  %v1752_v6 = vpop.f32.mrf.mxu0 }
 0x4b5   : > { %v1753_v7 = vadd.f32 %v3422_v57, %v1752_v6 }
 0x4b6   : > { %v3589_v8 = vpop.f32.mrf.mxu0 }
 0x4b7   : > { %v1756_v10 = vsel %vm1173_vm3, %v1753_v7, -inf }
 0x4b8   : > { %1757 = vmax.xlane.f32.xlu0 %v1756_v10  ;;  %v1927_v11 = vpop.f32.mrf.mxu0 }
 0x4b9   : > { %v1928_v12 = vadd.f32 %v3435_v9, %v1927_v11 }
 0x4ba   : > { %v3599_v13 = vpop.f32.mrf.mxu0 }
 0x4bb   : > { %v1931_v14 = vsel %vm1173_vm3, %v1928_v12, -inf }
 0x4bc   : > { %1932 = vmax.xlane.f32.xlu1 %v1931_v14  ;;  %v2093_v15 = vpop.f32.mrf.mxu0 }
 0x4bd   : > { %v2094_v16 = vadd.f32 %v3435_v9, %v2093_v15 }
 0x4be   : > { %v3609_v17 = vpop.f32.mrf.mxu0 }
 0x4bf   : > { %v2097_v18 = vsel %vm1173_vm3, %v2094_v16, -inf }
 0x4c0   : > { %2098 = vmax.xlane.f32.xlu0 %v2097_v18  ;;  %v2263_v19 = vpop.f32.mrf.mxu0 }
 0x4c1   : > { %v2264_v20 = vadd.f32 %v3435_v9, %v2263_v19 }
 0x4c2   : > { %v3619_v21 = vpop.f32.mrf.mxu0 }
 0x4c3   : > { %v2267_v22 = vsel %vm1173_vm3, %v2264_v20, -inf }
 0x4c4   : > { %2268 = vmax.xlane.f32.xlu1 %v2267_v22  ;;  %v2433_v23 = vpop.f32.mrf.mxu0 }
 0x4c5   : > { %v2434_v24 = vadd.f32 %v3435_v9, %v2433_v23 }
 0x4c6   : > { %v3629_v25 = vpop.f32.mrf.mxu0 }
 0x4c7   : > { %v2437_v26 = vsel %vm1173_vm3, %v2434_v24, -inf }
 0x4c8   : > { %2438 = vmax.xlane.f32.xlu0 %v2437_v26 }
 0x4d5   : > { %1767 = vrot.lane.b32.xlu1 %v4961_v40, %s4442_s18 }
 0x4de   : > { %1596 = vrot.lane.b32.xlu0 %v4961_v40, %s4443_s10 }
 0x535   : > { %v1250_v28 = vpop.xlane.xlu0 %1249 }
 0x536   : > { %v1251_v29 = vsub.f32 %v1245_v59, %v1250_v28 }
 0x538   : > { %v1252_v30 = vmul.f32 1.442695, %v1251_v29 }
 0x539   : > { %v1416_v31 = vpop.xlane.xlu1 %1415 }
 0x53a   : > { %3874 = vpow2.f32 %v1252_v30  ;;  %v1417_v33 = vsub.f32 %v1411_v63, %v1416_v31 }
 0x53c   : > { %v1418_v34 = vmul.f32 1.442695, %v1417_v33 }
 0x53d   : > { %v1587_v37 = vpop.xlane.xlu0 %1586 }
 0x53e   : > { %3876 = vpow2.f32 %v1418_v34  ;;  %v1588_v38 = vsub.f32 %v1582_v3, %v1587_v37 }
 0x540   : > { %v1589_v39 = vmul.f32 1.442695, %v1588_v38 }
 0x541   : > { %v1758_v42 = vpop.xlane.xlu0 %1757 }
 0x542   : > { %3878 = vpow2.f32 %v1589_v39  ;;  %v1759_v43 = vsub.f32 %v1753_v7, %v1758_v42 }
 0x544   : > { %v1760_v44 = vmul.f32 1.442695, %v1759_v43 }
 0x545   : > { %v1933_v52 = vpop.xlane.xlu1 %1932 }
 0x546   : > { %3880 = vpow2.f32 %v1760_v44  ;;  %v1934_v53 = vsub.f32 %v1928_v12, %v1933_v52  ;;  %v2532_v52 = vld [vmem:[%s4921_s2 + $0x8] sm:$0xff] }
 0x547   : > { %v3875_v45 = vpop.eup %3874 }
 0x548   : > { %v1254_v40 = vsel %vm1173_vm3, %v3875_v45, 0.0  ;;  %v1935_v57 = vmul.f32 1.442695, %v1934_v53 }
 0x549   : > { %1255 = vadd.xlane.f32.xlu1 %v1254_v40  ;;  %v2099_v54 = vpop.xlane.xlu0 %2098 }
 0x54a   : > { %v2100_v56 = vsub.f32 %v2094_v16, %v2099_v54  ;;  %3882 = vpow2.f32 %v1935_v57  ;;  %v2531_v54 = vld [vmem:[%s4921_s2] sm:$0xff] }
 0x54b   : > { %v3877_v46 = vpop.eup %3876 }
 0x54c   : > { %v1420_v47 = vsel %vm1173_vm3, %v3877_v46, 0.0  ;;  %v2101_v60 = vmul.f32 1.442695, %v2100_v56 }
 0x54d   : > { %1421 = vadd.xlane.f32.xlu0 %v1420_v47  ;;  %v2269_v55 = vpop.xlane.xlu1 %2268 }
 0x54e   : > { %v2270_v58 = vsub.f32 %v2264_v20, %v2269_v55  ;;  %3884 = vpow2.f32 %v2101_v60 }
 0x54f   : > { %v3879_v48 = vpop.eup %3878 }
 0x550   : > { %v1591_v49 = vsel %vm1173_vm3, %v3879_v48, 0.0  ;;  %v2271_v61 = vmul.f32 1.442695, %v2270_v58 }
 0x551   : > { %1592 = vadd.xlane.f32.xlu1 %v1591_v49  ;;  %v2439_v59 = vpop.xlane.xlu0 %2438  ;;  %v1768_v8 = vpop.permute.xlu1 %1767  ;;  %v2534_v49 = vld [vmem:[%s4921_s2 + $0x18] sm:$0xff] }
 0x552   : > { %v2440_v62 = vsub.f32 %v2434_v24, %v2439_v59  ;;  %3886 = vpow2.f32 %v2271_v61  ;;  %3635 = vmatprep.subr.mxu0 %v2534_v49 }
 0x553   : > { %v5040_v50 = vpop.eup %3880  ;;  %3636 = vmatpush3.msra.mxu0 %v2534_v49  ;;  %v2773_v49 = vld [vmem:[%s4931_s24 + $0x8] sm:$0xff] }
 0x554   : > { %v1762_v51 = vsel %vm1173_vm3, %v5040_v50, 0.0  ;;  %v2441_v63 = vmul.f32 1.442695, %v2440_v62 }
 0x555   : > { %1763 = vadd.xlane.f32.xlu0 %v1762_v51  ;;  %v1597_v9 = vpop.permute.xlu0 %1596 }
 0x556   : > { %3888 = vpow2.f32 %v2441_v63 }
 0x557   : > { %v3883_v0 = vpop.eup %3882 }
 0x558   : > { %v1937_v2 = vsel %vm1173_vm3, %v3883_v0, 0.0 }
 0x55b   : > { %v5048_v1 = vpop.eup %3884 }
 0x55c   : > { %v2103_v5 = vsel %vm1173_vm3, %v5048_v1, 0.0 }
 0x55f   : > { %v5051_v3 = vpop.eup %3886 }
 0x560   : > { %v2273_v4 = vsel %vm1173_vm3, %v5051_v3, 0.0 }
 0x562   : > { %2108 = vrot.lane.b32.xlu1 %v4969_v41, %s4440_s26 }
 0x563   : > { %v5057_v6 = vpop.eup %3888 }
 0x564   : > { %v2443_v7 = vsel %vm1173_vm3, %v5057_v6, 0.0 }
 0x56b   : > { %1942 = vrot.lane.b32.xlu0 %v4969_v41, %s4441_s25 }
 0x586   : > { %1938 = vadd.xlane.f32.xlu1 %v1937_v2 }
 0x58a   : > { %2274 = vadd.xlane.f32.xlu1 %v2273_v4  ;;  %2104 = vadd.xlane.f32.xlu0 %v2103_v5  ;;  %v3448_v4 = vld [vmem:[%s5290_s1] ss:$0 sm:$0xff] }
 0x58e   : > { %2444 = vadd.xlane.f32.xlu1 %v2443_v7 }
 0x59f   : > { %2448 = vrot.lane.b32.xlu1 %v4969_v41, %s4442_s18 }
 0x5a0   : > { %2278 = vrot.lane.b32.xlu0 %v4969_v41, %s4443_s10 }
 0x5d2   : > { %v1256_v10 = vpop.xlane.xlu1 %1255 }
 0x5d3   : > { %3890 = vrcp.f32 %v1256_v10 }
 0x5d6   : > { %v1422_v11 = vpop.xlane.xlu0 %1421 }
 0x5d7   : > { %3892 = vrcp.f32 %v1422_v11 }
 0x5da   : > { %v1593_v12 = vpop.xlane.xlu1 %1592 }
 0x5db   : > { %3894 = vrcp.f32 %v1593_v12 }
 0x5de   : > { %v1764_v13 = vpop.xlane.xlu0 %1763  ;;  %v2109_v22 = vpop.permute.xlu1 %2108 }
 0x5df   : > { %3896 = vrcp.f32 %v1764_v13 }
 0x5e0   : > { %v3891_v14 = vpop.eup %3890 }
 0x5e1   : > { %v1258_v15 = vmul.f32 %v3891_v14, %v3875_v45 }
 0x5e2   : > { %v1943_v21 = vpop.permute.xlu0 %1942 }
 0x5e3   : > { %3563 = vmatmul.mubr.msk.f32.vlgmr.msra.gmra.mxu1 %vm1173_vm3, %v1258_v15 }
 0x5e4   : > { %v3893_v16 = vpop.eup %3892  ;;  %3571 = vmatpush3.msra.mxu1 %v5035_v27  ;;  %3572 = vmatprep.mubr.msk.f32.mxu1 %vm4432_vm2, %v4431_v36 }
 0x5e5   : > { %3580 = vmatprep.subr.mxu1 %v4431_v36  ;;  %v1424_v41 = vmul.f32 %v3893_v16, %v3877_v46 }
 0x5e7   : > { %3573 = vmatmul.mubr.msk.f32.vlgmr.msra.gmra.mxu1 %vm1173_vm3, %v1424_v41 }
 0x5e8   : > { %v3895_v17 = vpop.eup %3894  ;;  %3581 = vmatpush3.msra.mxu1 %v1597_v9  ;;  %3582 = vmatprep.mubr.msk.f32.mxu1 %vm4432_vm2, %v4431_v36 }
 0x5e9   : > { %3590 = vmatprep.subr.mxu1 %v4431_v36  ;;  %v1595_v18 = vmul.f32 %v3895_v17, %v3879_v48 }
 0x5eb   : > { %3583 = vmatmul.mubr.msk.f32.vlgmr.msra.gmra.mxu1 %vm1173_vm3, %v1595_v18 }
 0x5ec   : > { %v3897_v19 = vpop.eup %3896  ;;  %3591 = vmatpush3.msra.mxu1 %v1768_v8  ;;  %3592 = vmatprep.mubr.msk.f32.mxu1 %vm4432_vm2, %v4431_v36 }
 0x5ed   : > { %3600 = vmatprep.subr.mxu1 %v4431_v36  ;;  %v1766_v20 = vmul.f32 %v3897_v19, %v5040_v50  ;;  %v2533_v50 = vld [vmem:[%s4921_s2 + $0x10] sm:$0xff]  ;;  %s5291_s2 = scalar_lea.vmem [#allocation14], %s4885_s28 }
 0x5ee   : > { %3637 = vmatprep.subr.mxu0 %v2533_v50 }
 0x5ef   : > { %3593 = vmatmul.mubr.msk.f32.vlgmr.msra.gmra.mxu1 %vm1173_vm3, %v1766_v20  ;;  %3638 = vmatpush3.msra.mxu0 %v2533_v50  ;;  %v2673_v20 = vld [vmem:[%s4926_s22 + $0x18] sm:$0xff]  ;;  %v2772_v50 = vld [vmem:[%s4931_s24] sm:$0xff] }
 0x5f0   : > { %3601 = vmatpush3.msra.mxu1 %v1943_v21  ;;  %3602 = vmatprep.mubr.msk.f32.mxu1 %vm4432_vm2, %v4431_v36  ;;  %v2672_v21 = vld [vmem:[%s4926_s22 + $0x10] sm:$0xff] }
 0x5f1   : > { %3610 = vmatprep.subr.mxu1 %v4431_v36  ;;  %3639 = vmatprep.subr.mxu0 %v2532_v52 }
 0x5f2   : > { %3640 = vmatpush3.msra.mxu0 %v2532_v52 }
 0x5f3   : > { %3641 = vmatprep.subr.mxu0 %v2531_v54 }
 0x5f4   : > { %3642 = vmatpush3.msra.mxu0 %v2531_v54 }
 0x60f   : > { %v1939_v23 = vpop.xlane.xlu1 %1938 }
 0x610   : > { %3898 = vrcp.f32 %v1939_v23  ;;  %v2670_v23 = vld [vmem:[%s4926_s22] sm:$0xff] }
 0x613   : > { %v2275_v24 = vpop.xlane.xlu1 %2274  ;;  %v2105_v25 = vpop.xlane.xlu0 %2104 }
 0x614   : > { %3900 = vrcp.f32 %v2105_v25 }
 0x615   : > { %3902 = vrcp.f32 %v2275_v24 }
 0x617   : > { %v2445_v26 = vpop.xlane.xlu1 %2444  ;;  %v2279_v33 = vpop.permute.xlu0 %2278 }
 0x618   : > { %3904 = vrcp.f32 %v2445_v26 }
 0x61b   : > { %v2449_v38 = vpop.permute.xlu1 %2448 }
 0x61d   : > { %v3899_v27 = vpop.eup %3898 }
 0x61e   : > { %v1941_v28 = vmul.f32 %v3899_v27, %v3883_v0 }
 0x620   : > { %3603 = vmatmul.mubr.msk.f32.vlgmr.msra.gmra.mxu1 %vm1173_vm3, %v1941_v28 }
 0x621   : > { %3611 = vmatpush3.msra.mxu1 %v2109_v22  ;;  %3612 = vmatprep.mubr.msk.f32.mxu1 %vm4432_vm2, %v4431_v36  ;;  %v3901_v29 = vpop.eup %3900  ;;  %v2671_v22 = vld [vmem:[%s4926_s22 + $0x8] sm:$0xff]  ;;  %s5293_s22 = scalar_lea.vmem [#allocation16], %s4885_s28 }
 0x622   : > { %3620 = vmatprep.subr.mxu1 %v4431_v36  ;;  %v2107_v30 = vmul.f32 %v3901_v29, %v5048_v1  ;;  %v3903_v31 = vpop.eup %3902 }
 0x623   : > { %v2277_v34 = vmul.f32 %v3903_v31, %v5051_v3  ;;  %v3451_v31 = vld [vmem:[%s5291_s2] ss:$0 sm:$0xff] }
 0x624   : > { %3613 = vmatmul.mubr.msk.f32.vlgmr.msra.gmra.mxu1 %vm1173_vm3, %v2107_v30 }
 0x625   : > { %3621 = vmatpush3.msra.mxu1 %v2279_v33  ;;  %3622 = vmatprep.mubr.msk.f32.mxu1 %vm4432_vm2, %v4431_v36  ;;  %v3905_v37 = vpop.eup %3904 }
 0x626   : > { %3630 = vmatprep.subr.mxu1 %v4431_v36  ;;  %v2447_v39 = vmul.f32 %v3905_v37, %v5057_v6 }
 0x628   : > { %3623 = vmatmul.mubr.msk.f32.vlgmr.msra.gmra.mxu1 %vm1173_vm3, %v2277_v34  ;;  %v3452_v34 = vld [vmem:[%s5292_s4] ss:$0 sm:$0xff] }
 0x629   : > { %3631 = vmatpush3.msra.mxu1 %v2449_v38  ;;  %3632 = vmatprep.mubr.msk.f32.mxu1 %vm4432_vm2, %v4431_v36 }
 0x62a   : > { %3646 = vmatprep.subr.mxu1 %v2673_v20 }
 0x62c   : > { %3633 = vmatmul.mubr.msk.f32.vlgmr.msra.gmra.mxu1 %vm1173_vm3, %v2447_v39 }
 0x62d   : > { %3647 = vmatpush3.msra.mxu1 %v2673_v20 }
 0x62e   : > { %3648 = vmatprep.subr.mxu1 %v2672_v21 }
 0x62f   : > { %3649 = vmatpush3.msra.mxu1 %v2672_v21 }
 0x630   : > { %3650 = vmatprep.subr.mxu1 %v2671_v22 }
 0x631   : > { %3651 = vmatpush3.msra.mxu1 %v2671_v22 }
 0x632   : > { %3652 = vmatprep.subr.mxu1 %v2670_v23 }
 0x633   : > { %3653 = vmatpush3.msra.mxu1 %v2670_v23 }
 0x6a3   : > { %v1331_v42 = vpop.f32.mrf.mxu1 }
 0x6a4   : > { %1335 = vst.msk [vmem:[#allocation3] sm:$0xff] %vm1173_vm3, %v1331_v42 }
 0x6a5   : > { %v3564_v43 = vpop.f32.mrf.mxu1 }
 0x6a7   : > { %v1497_v44 = vpop.f32.mrf.mxu1 }
 0x6a8   : > { %1502 = vrot.lane.b32.xlu0 %v1497_v44, %s4444_s20 }
 0x6a9   : > { %v3574_v45 = vpop.f32.mrf.mxu1 }
 0x6aa   : > { %v2779_v45 = vld [vmem:[%s4931_s24 + $0x38] sm:$0xff] }
 0x6ab   : > { %v1668_v40 = vpop.f32.mrf.mxu1  ;;  %3657 = vmatprep.subr.mxu0 %v2779_v45 }
 0x6ac   : > { %1673 = vrot.lane.b32.xlu1 %v1668_v40, %s4445_s12  ;;  %v2778_v40 = vld [vmem:[%s4931_s24 + $0x30] sm:$0xff] }
 0x6ad   : > { %v3584_v46 = vpop.f32.mrf.mxu1 }
 0x6ae   : > { %v2777_v46 = vld [vmem:[%s4931_s24 + $0x28] sm:$0xff] }
 0x6af   : > { %v1839_v36 = vpop.f32.mrf.mxu1 }
 0x6b0   : > { %1844 = vrot.lane.b32.xlu1 %v1839_v36, %s4446_s29  ;;  %v2776_v36 = vld [vmem:[%s4931_s24 + $0x20] sm:$0xff] }
 0x6b1   : > { %v3594_v47 = vpop.f32.mrf.mxu1 }
 0x6b2   : > { %v2775_v47 = vld [vmem:[%s4931_s24 + $0x18] sm:$0xff] }
 0x6e0   : > { %v2014_v48 = vpop.f32.mrf.mxu1 }
 0x6e1   : > { %2018 = vst.msk [vmem:[#allocation3 + $0x8] sm:$0xff] %vm1173_vm3, %v2014_v48  ;;  %v2774_v48 = vld [vmem:[%s4931_s24 + $0x10] sm:$0xff]  ;;  %s5294_s24 = scalar_lea.vmem [#allocation17], %s4885_s28 }
 0x6e2   : > { %v3604_v51 = vpop.f32.mrf.mxu1 }
 0x6e3   : > { %v3453_v51 = vld [vmem:[%s5293_s22] ss:$0 sm:$0xff] }
 0x6e4   : > { %v2180_v53 = vpop.f32.mrf.mxu1 }
 0x6e5   : > { %2185 = vrot.lane.b32.xlu0 %v2180_v53, %s4444_s20 }
 0x6e6   : > { %v3614_v55 = vpop.f32.mrf.mxu1 }
 0x6e8   : > { %v2350_v56 = vpop.f32.mrf.mxu1 }
 0x6e9   : > { %2355 = vrot.lane.b32.xlu0 %v2350_v56, %s4445_s12 }
 0x6ea   : > { %v3624_v57 = vpop.f32.mrf.mxu1 }
 0x6ec   : > { %v2520_v58 = vpop.f32.mrf.mxu1 }
 0x6ed   : > { %2525 = vrot.lane.b32.xlu1 %v2520_v58, %s4446_s29 }
 0x6ee   : > { %v3634_v59 = vpop.f32.mrf.mxu1 }
 0x71a   : > { %v1503_v60 = vpop.permute.xlu0 %1502 }
 0x71b   : > { %1506 = vst.msk [vmem:[#allocation3] sm:$0xff] %vm1505_vm4, %v1503_v60 }
 0x71e   : > { %v1674_v61 = vpop.permute.xlu1 %1673 }
 0x71f   : > { %1677 = vst.msk [vmem:[#allocation3] sm:$0xff] %vm1676_vm5, %v1674_v61 }
 0x722   : > { %v1845_v62 = vpop.permute.xlu1 %1844 }
 0x723   : > { %1848 = vst.msk [vmem:[#allocation3] sm:$0xff] %vm1847_vm6, %v1845_v62 }
 0x72a   : > { %v2529_v63 = vld [vmem:[#allocation3] sm:$0xff] }
 0x72b   : > { %3643 = vmatprep.mubr.msk.f32.mxu0 %vm1083_vm1, %v2529_v63 }
 0x757   : > { %v2186_v0 = vpop.permute.xlu0 %2185 }
 0x758   : > { %2188 = vst.msk [vmem:[#allocation3 + $0x8] sm:$0xff] %vm1505_vm4, %v2186_v0 }
 0x75b   : > { %v2356_v1 = vpop.permute.xlu0 %2355 }
 0x75c   : > { %2358 = vst.msk [vmem:[#allocation3 + $0x8] sm:$0xff] %vm1676_vm5, %v2356_v1 }
 0x75f   : > { %v2526_v2 = vpop.permute.xlu1 %2525 }
 0x760   : > { %2528 = vst.msk [vmem:[#allocation3 + $0x8] sm:$0xff] %vm1847_vm6, %v2526_v2  ;;  %v3456_v2 = vld [vmem:[%s5294_s24] ss:$0 sm:$0xff] }
 0x767   : > { %v2530_v3 = vld [vmem:[#allocation3 + $0x8] sm:$0xff] }
 0x768   : > { %3644 = vmatmul.mubr.msk.f32.vlgmr.msra.gmra.mxu0 %vm1083_vm1, %v2530_v3 }
 0x769   : > { %3658 = vmatpush3.msra.mxu0 %v2779_v45 }
 0x76a   : > { %3659 = vmatprep.subr.mxu0 %v2778_v40 }
 0x76b   : > { %3660 = vmatpush3.msra.mxu0 %v2778_v40 }
 0x76c   : > { %3661 = vmatprep.subr.mxu0 %v2777_v46 }
 0x76d   : > { %3662 = vmatpush3.msra.mxu0 %v2777_v46 }
 0x76e   : > { %3663 = vmatprep.subr.mxu0 %v2776_v36 }
 0x76f   : > { %3664 = vmatpush3.msra.mxu0 %v2776_v36 }
 0x770   : > { %3665 = vmatprep.subr.mxu0 %v2775_v47 }
 0x771   : > { %3666 = vmatpush3.msra.mxu0 %v2775_v47 }
 0x772   : > { %3667 = vmatprep.subr.mxu0 %v2774_v48 }
 0x773   : > { %3668 = vmatpush3.msra.mxu0 %v2774_v48 }
 0x774   : > { %3669 = vmatprep.subr.mxu0 %v2773_v49 }
 0x775   : > { %3670 = vmatpush3.msra.mxu0 %v2773_v49 }
 0x776   : > { %3671 = vmatprep.subr.mxu0 %v2772_v50 }
 0x777   : > { %3672 = vmatpush3.msra.mxu0 %v2772_v50 }
 0x828   : > { %v3645_v5 = vpop.f32.mrf.mxu0 }
 0x829   : > { %v2620_v6 = vadd.f32 %v3645_v5, %v3448_v4 }
 0x82a   : > { %v2614_v7 = vpop.f32.mrf.mxu0 }
 0x82b   : > { %v2615_v8 = vadd.f32 %v3448_v4, %v2614_v7  ;;  %v2624_v9 = vadd.f32 %v2620_v6, %v4949_v35 }
 0x82d   : > { %v2630_v10 = vsel %vm1083_vm1, %v2624_v9, 0.0  ;;  %v2623_v11 = vadd.f32 %v2615_v8, %v4943_v32 }
 0x82e   : > { %2631 = vadd.xlane.f32.xlu1 %v2630_v10 }
 0x82f   : > { %v2627_v12 = vsel %vm1083_vm1, %v2623_v11, 0.0 }
 0x830   : > { %2628 = vadd.xlane.f32.xlu0 %v2627_v12 }
 0x8b7   : > { %v2632_v13 = vpop.xlane.xlu1 %2631 }
 0x8b8   : > { %v2635_v14 = vmul.f32 0.03125, %v2632_v13 }
 0x8b9   : > { %v2629_v15 = vpop.xlane.xlu0 %2628 }
 0x8ba   : > { %v2634_v16 = vmul.f32 0.03125, %v2629_v15  ;;  %v2637_v41 = vsub.f32 %v2624_v9, %v2635_v14 }
 0x8bc   : > { %v2636_v17 = vsub.f32 %v2623_v11, %v2634_v16  ;;  %v2639_v19 = vmul.f32 %v2637_v41, %v2637_v41 }
 0x8be   : > { %v2638_v18 = vmul.f32 %v2636_v17, %v2636_v17  ;;  %v2643_v32 = vsel %vm1083_vm1, %v2639_v19, 0.0 }
 0x8c0   : > { %v2640_v35 = vsel %vm1083_vm1, %v2638_v18, 0.0 }
 0x8c1   : > { %2641 = vadd.xlane.f32.xlu0 %v2640_v35 }
 0x8c5   : > { %2644 = vadd.xlane.f32.xlu0 %v2643_v32 }
 0x94a   : > { %v2642_v24 = vpop.xlane.xlu0 %2641 }
 0x94b   : > { %v2646_v25 = vmul.f32 0.03125, %v2642_v24 }
 0x94d   : > { %v2648_v26 = vadd.f32 1e-12, %v2646_v25  ;;  %v3459_v25 = vld [vmem:[%s5295_s5] ss:$0 sm:$0xff] }
 0x94e   : > { %v2645_v27 = vpop.xlane.xlu0 %2644 }
 0x94f   : > { %3906 = vrsqrt.f32 %v2648_v26  ;;  %v2647_v28 = vmul.f32 0.03125, %v2645_v27 }
 0x951   : > { %v2649_v29 = vadd.f32 1e-12, %v2647_v28  ;;  %v3460_v28 = vld [vmem:[%s5296_s0] ss:$0 sm:$0xff] }
 0x953   : > { %3908 = vrsqrt.f32 %v2649_v29 }
 0x95c   : > { %v3907_v30 = vpop.eup %3906 }
 0x95d   : > { %v2652_v33 = vmul.f32 %v3907_v30, %v2636_v17 }
 0x95f   : > { %v2660_v37 = vmul.f32 %v3451_v31, %v2652_v33 }
 0x960   : > { %v3909_v38 = vpop.eup %3908 }
 0x961   : > { %v2653_v39 = vmul.f32 %v3909_v38, %v2637_v41  ;;  %v2668_v42 = vadd.f32 %v3452_v34, %v2660_v37 }
 0x963   : > { %v2661_v43 = vmul.f32 %v3451_v31, %v2653_v39  ;;  %3654 = vmatprep.mubr.msk.f32.mxu1 %vm1083_vm1, %v2668_v42 }
 0x965   : > { %v2669_v44 = vadd.f32 %v3452_v34, %v2661_v43 }
 0x967   : > { %3655 = vmatmul.mubr.msk.f32.vlgmr.msra.gmra.mxu1 %vm1083_vm1, %v2669_v44 }
 0xa27   : > { %v3656_v52 = vpop.f32.mrf.mxu1 }
 0xa28   : > { %v2759_v53 = vadd.f32 %v3656_v52, %v3453_v51 }
 0xa29   : > { %v2753_v54 = vpop.f32.mrf.mxu1 }
 0xa2a   : > { %v2765_v55 = vmul.f32 0.70710677, %v2759_v53  ;;  %v2754_v56 = vadd.f32 %v3453_v51, %v2753_v54  ;;  %v2763_v63 = vmul.f32 0.5, %v2759_v53 }
 0xa2c   : > { %3910 = verf.f32 %v2765_v55  ;;  %v2764_v57 = vmul.f32 0.70710677, %v2754_v56  ;;  %v2762_v61 = vmul.f32 0.5, %v2754_v56 }
 0xa2e   : > { %3912 = verf.f32 %v2764_v57 }
 0xa39   : > { %v3911_v58 = vpop.eup %3910 }
 0xa3a   : > { %v2769_v60 = vadd.f32 1.0, %v3911_v58 }
 0xa3b   : > { %v3913_v59 = vpop.eup %3912 }
 0xa3c   : > { %v2768_v62 = vadd.f32 1.0, %v3913_v59  ;;  %v2771_v1 = vmul.f32 %v2769_v60, %v2763_v63 }
 0xa3e   : > { %v2770_v0 = vmul.f32 %v2768_v62, %v2762_v61 }
 0xa40   : > { %3673 = vmatprep.mubr.msk.f32.mxu0 %vm2787_vm7, %v2770_v0 }
 0xa41   : > { %3674 = vmatmul.mubr.msk.f32.vlgmr.msra.gmra.mxu0 %vm2787_vm7, %v2771_v1 }
 0xb01   : > { %v3675_v3 = vpop.f32.mrf.mxu0 }
 0xb02   : > { %v2866_v4 = vadd.f32 %v3675_v3, %v3456_v2 }
 0xb03   : > { %v2860_v5 = vpop.f32.mrf.mxu0 }
 0xb04   : > { %v2861_v6 = vadd.f32 %v3456_v2, %v2860_v5  ;;  %v2870_v7 = vadd.f32 %v2866_v4, %v2669_v44 }
 0xb06   : > { %v2876_v8 = vsel %vm1083_vm1, %v2870_v7, 0.0  ;;  %v2869_v9 = vadd.f32 %v2861_v6, %v2668_v42 }
 0xb07   : > { %2877 = vadd.xlane.f32.xlu0 %v2876_v8 }
 0xb08   : > { %v2873_v10 = vsel %vm1083_vm1, %v2869_v9, 0.0 }
 0xb09   : > { %2874 = vadd.xlane.f32.xlu1 %v2873_v10 }
 0xb90   : > { %v2878_v11 = vpop.xlane.xlu0 %2877 }
 0xb91   : > { %v2880_v12 = vmul.f32 0.03125, %v2878_v11 }
 0xb92   : > { %v2875_v13 = vpop.xlane.xlu1 %2874 }
 0xb93   : > { %v2882_v14 = vsub.f32 %v2870_v7, %v2880_v12  ;;  %v2879_v15 = vmul.f32 0.03125, %v2875_v13 }
 0xb95   : > { %v2881_v16 = vsub.f32 %v2869_v9, %v2879_v15  ;;  %v2884_v41 = vmul.f32 %v2882_v14, %v2882_v14 }
 0xb97   : > { %v2888_v17 = vsel %vm1083_vm1, %v2884_v41, 0.0  ;;  %v2883_v18 = vmul.f32 %v2881_v16, %v2881_v16 }
 0xb98   : > { %2889 = vadd.xlane.f32.xlu0 %v2888_v17 }
 0xb99   : > { %v2885_v35 = vsel %vm1083_vm1, %v2883_v18, 0.0 }
 0xb9a   : > { %2886 = vadd.xlane.f32.xlu1 %v2885_v35 }
 0xc21   : > { %v2890_v19 = vpop.xlane.xlu0 %2889 }
 0xc22   : > { %v2892_v32 = vmul.f32 0.03125, %v2890_v19 }
 0xc23   : > { %v2887_v20 = vpop.xlane.xlu1 %2886 }
 0xc24   : > { %v2894_v21 = vadd.f32 1e-12, %v2892_v32  ;;  %v2891_v22 = vmul.f32 0.03125, %v2887_v20 }
 0xc26   : > { %3914 = vrsqrt.f32 %v2894_v21  ;;  %v2893_v23 = vadd.f32 1e-12, %v2891_v22 }
 0xc28   : > { %3916 = vrsqrt.f32 %v2893_v23 }
 0xc33   : > { %v3915_v24 = vpop.eup %3914 }
 0xc34   : > { %v2898_v26 = vmul.f32 %v3915_v24, %v2882_v14 }
 0xc35   : > { %v3917_v27 = vpop.eup %3916 }
 0xc36   : > { %v2906_v29 = vmul.f32 %v3459_v25, %v2898_v26  ;;  %v2897_v30 = vmul.f32 %v3917_v27, %v2881_v16 }
 0xc38   : > { %v2914_v31 = vadd.f32 %v3460_v28, %v2906_v29  ;;  %v2905_v33 = vmul.f32 %v3459_v25, %v2897_v30  ;;  %2920 = sbr.rel (%p3461_p1) target bundleno = 3547 (0xddb), region = 168 }
 0xc3a   : > { %2916 = vst.msk [vmem:[#allocation2 + $0x8] sm:$0xff] %vm1083_vm1, %v2914_v31  ;;  %v2913_v34 = vadd.f32 %v3460_v28, %v2905_v33 }
 0xc3c   : > { %2915 = vst.msk [vmem:[#allocation2] sm:$0xff] %vm1083_vm1, %v2913_v34 }
 0xc3d   : > { %v2928_v37 = vld [vmem:[#allocation20 + $0x18] sm:$0xff]  ;;  %vm2921_vm8 = vcmask 253952   ;;  %v4447_v38 = vmov 0.0   ;;  %v2927_v39 = vld [vmem:[#allocation20 + $0x10] sm:$0xff]  ;;  %vm4448_vm9 = vmmov 0   ;;  %v2926_v42 = vld [vmem:[#allocation20 + $0x8] sm:$0xff] }
 0xc3e   : > { %3676 = vmatprep.subr.mxu0 %v4447_v38  ;;  %3684 = vmatprep.mubr.msk.f32.mxu0 %vm4448_vm9, %v4447_v38  ;;  %2922 = vst.msk [vmem:[#allocation3] sm:$0x1] %vm2921_vm8, %v2913_v34  ;;  %2923 = vst.msk [vmem:[#allocation3 + $0x1] sm:$0x1] %vm2921_vm8, %v2914_v31  ;;  %v2925_v43 = vld [vmem:[#allocation20] sm:$0xff]  ;;  %v3013_v45 = vld [vmem:[%s5297_s23 + $0x18] sm:$0xff] }
 0xc3f   : > { %3677 = vmatpush3.msra.mxu0 %v2928_v37  ;;  %3687 = vmatprep.subr.mxu1 %v4447_v38  ;;  %v3012_v40 = vld [vmem:[%s5298_s30 + $0x10] sm:$0xff]  ;;  %v3011_v46 = vld [vmem:[%s5298_s30 + $0x8] sm:$0xff]  ;;  %v3010_v36 = vld [vmem:[%s5298_s30] sm:$0xff] }
 0xc40   : > { %3678 = vmatprep.subr.mxu0 %v4447_v38  ;;  %3695 = vmatprep.mubr.msk.f32.mxu1 %vm4448_vm9, %v4447_v38  ;;  %v3462_v47 = vld [vmem:[#allocation21] ss:$0 sm:$0xff]  ;;  %v3464_v52 = vld [vmem:[#allocation22] ss:$0 sm:$0xff] }
 0xc41   : > { %3679 = vmatpush3.msra.mxu0 %v2927_v39  ;;  %3688 = vmatpush3.msra.mxu1 %v3013_v45 }
 0xc42   : > { %3680 = vmatprep.subr.mxu0 %v4447_v38  ;;  %3689 = vmatprep.subr.mxu1 %v4447_v38 }
 0xc43   : > { %3681 = vmatpush3.msra.mxu0 %v2926_v42  ;;  %3690 = vmatpush3.msra.mxu1 %v3012_v40 }
 0xc44   : > { %3682 = vmatprep.subr.mxu0 %v4447_v38  ;;  %3691 = vmatprep.subr.mxu1 %v4447_v38 }
 0xc45   : > { %3683 = vmatpush3.msra.mxu0 %v2925_v43  ;;  %v2924_v44 = vld [vmem:[#allocation3] sm:$0x3]  ;;  %3692 = vmatpush3.msra.mxu1 %v3011_v46 }
 0xc46   : > { %3685 = vmatmul.mubr.msk.f32.vlgmr.msra.gmra.mxu0 %vm1083_vm1, %v2924_v44  ;;  %3693 = vmatprep.subr.mxu1 %v4447_v38 }
 0xc47   : > { %3694 = vmatpush3.msra.mxu1 %v3010_v36 }
 0xd06   : > { %v3005_v48 = vpop.f32.mrf.mxu0 }
 0xd07   : > { %v3006_v49 = vadd.f32 %v3462_v47, %v3005_v48 }
 0xd08   : > { %v3686_v50 = vpop.f32.mrf.mxu0 }
 0xd09   : > { %3918 = vtanh.f32 %v3006_v49 }
 0xd16   : > { %v3919_v51 = vpop.eup %3918 }
 0xd17   : > { %3696 = vmatmul.mubr.msk.f32.vlgmr.msra.gmra.mxu1 %vm1083_vm1, %v3919_v51 }
 0xdd7   : > { %v3090_v53 = vpop.f32.mrf.mxu1 }
 0xdd8   : > { %v3091_v54 = vadd.f32 %v3464_v52, %v3090_v53 }
 0xdd9   : > { %v3697_v55 = vpop.f32.mrf.mxu1 }
 0xdda   : > { %3094 = vst [vmem:[#allocation24] sm:$0x3] %v3091_v54 }
 0xddb PF: > { %p3808_p2 = scmp.eq.s32.totalorder %s4576_s3, 1  ;;  %s4449_s20 = smov [#allocation24]  }
 0xddc   : > { %s3102_s12 = sshll.u32 %s4449_s20, 4  ;;  %s3103_s12 = int_to_ptr.vmem [resolvable:$true] %s3102_s12 }
 0xddd   : > { %s4326_s29 = scalar_lea.vmem %s3103_s12, 32  ;;  %p4333_p11 = scmp.lt.s32.totalorder %s3103_s12, %s3103_s12 }
 0xdde   : > { %p4327_p4 = scmp.ne.s32.totalorder %s3103_s12, %s4326_s29  ;;  %p4334_p9 = scmp.lt.s32.totalorder %s4326_s29, %s4326_s29 }
 0xde0   : > { %p4328_p7 = pnand %p4327_p4, %p3808_p2  ;;  %p4335_p10 = por %p4334_p9, %p4333_p11 }
 0xde2   : > { %p4329_p13 = pneg %p4328_p7 }
 0xde4   : > { %p4336_p0 = pnand %p4335_p10, %p4329_p13 }
 0xde6   : > { %4339 = shalt.err (!%p4336_p0)
}
 0xde7   : > { %s5299_s4 = sld [smem:[#allocation49_spill]] }
 0xded   : > { %3743 = dma.vmem_to_hbm [thread:$0]  (%p3808_p2), %s3103_s12, 32, %s5299_s4, [#allocation6]  }
 0xdee   : > { %4395 = dma.done.wait (%p3808_p2), [#allocation6], 32  }
 0xdef   : > { %4397 = vsyncadd (%p3808_p2), [#allocation6], 4294967264 }
 0xdf0 PF: > { %s5300_s24 = sld [smem:[#allocation36_spill]] }
 0xdf1   : > { %s5301_s1 = sld [smem:[#allocation33_spill]] }
 0xdf2   : > { %s5302_s22 = sld [smem:[#allocation34_spill]] }
 0xdf3   : > { %s5303_s23 = sld [smem:[#allocation37_spill]] }
 0xdf6   : > { %p32_p5 = scmp.ge.s32.totalorder %s5300_s24, 4  }
 0xdf8   :  { %34 = sbr.rel (!%p32_p5) target bundleno = 18 (0x12), region = 261 }
 0xdfd   :  { %3115 = vsyncpa [#allocation5], 1 }
 0xdfe   :  { %3117 = vsyncpa [#allocation5 + $0x1], 1 }
 0xdff   :  { %3118 = vsyncpa [#allocation8], 1 }
 0xe00   :  { %3119 = vsyncpa [#allocation11], 1 }
 0xe01   :  { %3120 = vsyncpa [#allocation23], 1 }
 0xe02   :  { %3121 = vsyncpa [#allocation6], 1 }
 0xe03   :  { %3123 = vsyncpa [#allocation6 + $0x1], 1 }

</bundles_post_ra>
